<compile_context>
chip_gen: v7x
topology: tpu7x:2x2x1
jax: 0.10.0
libtpu: 0.0.40
codegen_flags: <defaults>
</compile_context>

<pallas_src>
import math

import jax
import jax.numpy as jnp
from jax import lax
from jax.experimental import pallas as pl
from jax.experimental.pallas import tpu as pltpu


def _make_kernel(num_imgs, hw, d_model, batch, norm_scale, eps):
    S = num_imgs * hw
    norm_mul = norm_scale * math.sqrt(d_model * hw)

    def kernel(src_ref, pos_ref, wqkv_ref, bqkv_ref, wo_ref, bo_ref, out_ref):
        # Arrays are (S, B*D), lane-packed across batch.
        x = src_ref[...] + pos_ref[...] * 0.001                      # (S, B*D)

        outs = []
        for b in range(batch):                                       # small static constant
            xb = x[:, b * d_model:(b + 1) * d_model]                 # (S, D)

            # --- fused QKV projection (softmax scale pre-folded into Q cols) ---
            qkv = jnp.dot(xb, wqkv_ref[...],
                          preferred_element_type=jnp.float32) + bqkv_ref[...]
            q = qkv[:, :d_model]
            k = qkv[:, d_model:2 * d_model]
            v = qkv[:, 2 * d_model:]

            # q . k^T without materializing k.T: contract the last dims directly.
            scores = lax.dot_general(q, k, (((1,), (1,)), ((), ())),
                                     preferred_element_type=jnp.float32)   # (S, S)
            scores = scores - jnp.max(scores, axis=-1, keepdims=True)
            p = jnp.exp(scores)
            p = p * pl.reciprocal(jnp.sum(p, axis=-1, keepdims=True), approx=True)

            attn = jnp.dot(p, v, preferred_element_type=jnp.float32)       # (S, D)
            attn = jnp.dot(attn, wo_ref[...],
                           preferred_element_type=jnp.float32) + bo_ref[...]

            # --- residual ---
            y = xb + attn                                                   # (S, D)

            # --- InstanceL2Norm, vectorized over the image instances ---
            y3 = y.reshape(num_imgs, hw, d_model)                           # leading-dim split
            sq = y3 * y3
            ssq = jnp.sum(jnp.sum(sq, axis=2, keepdims=True), axis=1, keepdims=True)
            factor = norm_mul * lax.rsqrt(ssq + eps)                        # (num_imgs,1,1)
            outs.append((y3 * factor).reshape(S, d_model))

        # single lane-packed store for the whole block
        out_ref[...] = jnp.concatenate(outs, axis=1)                        # (S, B*D)

    return kernel


def transformer_embed_encoder_layer(src, input_shape, pos_embed, params):
    """src, pos_embed: (S, B, D) float32 (PyTorch seq-first). Returns (S, B, D)."""
    num_imgs, B, D, h, w = input_shape
    hw = h * w
    S = num_imgs * hw
    assert src.shape == (S, B, D)

    norm_scale = math.sqrt(1.0 / (D * 4 * 4))
    eps = 1e-5

    wq, wk, wv, wo, bq, bk, bv, bo = params
    inv_sqrt_d = 1.0 / math.sqrt(D)

    # Fuse QKV weights / biases; fold the softmax 1/sqrt(D) into the Q columns.
    wqkv = jnp.concatenate([wq * inv_sqrt_d, wk, wv], axis=1)   # (D, 3D)
    bqkv = jnp.concatenate([bq * inv_sqrt_d, bk, bv], axis=1)   # (1, 3D)

    # layout: merge trailing (B, D) dims -- a free row-major reshape -- instead of
    # HBM->HBM transposes. Kernel sees lane-packed (S, B*D) slabs.
    src2 = src.reshape(S, B * D)
    pos2 = pos_embed.reshape(S, B * D)

    kernel = _make_kernel(num_imgs, hw, D, B, norm_scale, eps)
    vmem = pl.BlockSpec(memory_space=pltpu.MemorySpace.VMEM)

    out = pl.pallas_call(
        kernel,
        out_shape=jax.ShapeDtypeStruct((S, B * D), jnp.float32),
        in_specs=[vmem] * 6,
        out_specs=vmem,
    )(src2, pos2, wqkv, bqkv, wo, bo)

    return out.reshape(S, B, D)


def reference(src, input_shape, pos_embed, params):
    """Pure-JAX reference mirroring the PyTorch forward (including reshape/permute path)."""
    num_imgs, B, D, h, w = input_shape
    wq, wk, wv, wo, bq, bk, bv, bo = params

    x = src + pos_embed * 0.001                    # (S, B, D)
    xb = jnp.transpose(x, (1, 0, 2))               # (B, S, D)
    q = xb @ wq + bq
    k = xb @ wk + bk
    v = xb @ wv + bv
    scores = jnp.einsum('bqd,bkd->bqk', q, k) / math.sqrt(D)
    p = jax.nn.softmax(scores, axis=-1)
    attn = jnp.einsum('bqk,bkd->bqd', p, v) @ wo + bo
    y = xb + attn
    src2 = jnp.transpose(y, (1, 0, 2))             # (S, B, D)

    # instance_norm: exact PyTorch reshape/permute sequence
    t = src2.reshape(num_imgs, h, w, B, D).transpose(0, 3, 4, 1, 2)   # (ni, B, D, h, w)
    t = t.reshape(-1, D, h, w)                                        # (ni*B, D, h, w)
    norm_scale = math.sqrt(1.0 / (D * 4 * 4))
    eps = 1e-5
    ssq = jnp.sum((t * t).reshape(t.shape[0], -1), axis=-1).reshape(-1, 1, 1, 1)
    t = t * (norm_scale * jnp.sqrt((D * h * w) / (ssq + eps)))
    t = t.reshape(num_imgs, B, D, h * w).transpose(0, 3, 1, 2).reshape(-1, B, D)
    return t


if __name__ == "__main__":
    # Small shapes consistent with the module: num_imgs=2, batch=2, d_model=32, h=w=8.
    num_imgs, B, D, h, w = 2, 2, 32, 8, 8
    S = num_imgs * h * w
    input_shape = (num_imgs, B, D, h, w)

    key = jax.random.PRNGKey(0)
    k_src, k_pos, kq, kk, kv, ko, kbq, kbk, kbv, kbo = jax.random.split(key, 10)

    src = jax.random.normal(k_src, (S, B, D), dtype=jnp.float32)
    pos_embed = jax.random.normal(k_pos, (S, B, D), dtype=jnp.float32)

    wscale = 1.0 / math.sqrt(D)
    params = (
        jax.random.normal(kq, (D, D), jnp.float32) * wscale,   # Wq
        jax.random.normal(kk, (D, D), jnp.float32) * wscale,   # Wk
        jax.random.normal(kv, (D, D), jnp.float32) * wscale,   # Wv
        jax.random.normal(ko, (D, D), jnp.float32) * wscale,   # Wo
        jax.random.normal(kbq, (1, D), jnp.float32) * 0.01,    # bq
        jax.random.normal(kbk, (1, D), jnp.float32) * 0.01,    # bk
        jax.random.normal(kbv, (1, D), jnp.float32) * 0.01,    # bv
        jax.random.normal(kbo, (1, D), jnp.float32) * 0.01,    # bo
    )

    out = transformer_embed_encoder_layer(src, input_shape, pos_embed, params)
    out = jax.block_until_ready(out)

    ref = reference(src, input_shape, pos_embed, params)
    assert out.shape == (S, B, D)
    # approx reciprocal in the softmax denominator -> slightly looser tolerance
    assert jnp.allclose(out, ref, rtol=1e-2, atol=1e-2), "kernel does not match reference"

    print("KERNEL_OK")
</pallas_src>

<mosaic_0001>
module attributes {stable_mosaic.version = 11 : i64} {
  func.func @kernel(%arg0: memref<128x64xf32, #tpu.memory_space<vmem>>, %arg1: memref<128x64xf32, #tpu.memory_space<vmem>>, %arg2: memref<32x96xf32, #tpu.memory_space<vmem>>, %arg3: memref<1x96xf32, #tpu.memory_space<vmem>>, %arg4: memref<32x32xf32, #tpu.memory_space<vmem>>, %arg5: memref<1x32xf32, #tpu.memory_space<vmem>>, %arg6: memref<128x64xf32, #tpu.memory_space<vmem>>) attributes {dimension_semantics = [], scalar_prefetch = 0 : i64, scratch_operands = 0 : i64, tpu.core_type = #tpu.core_type<tc>} {
    %c0 = arith.constant 0 : index
    %c0_0 = arith.constant 0 : index
    %0 = vector.load %arg0[%c0, %c0_0] : memref<128x64xf32, #tpu.memory_space<vmem>>, vector<128x64xf32>
    %c0_1 = arith.constant 0 : index
    %c0_2 = arith.constant 0 : index
    %1 = vector.load %arg1[%c0_1, %c0_2] : memref<128x64xf32, #tpu.memory_space<vmem>>, vector<128x64xf32>
    %cst = arith.constant 1.000000e-03 : f32
    %2 = vector.broadcast %cst : f32 to vector<128x64xf32>
    %3 = arith.mulf %1, %2 : vector<128x64xf32>
    %4 = arith.addf %0, %3 : vector<128x64xf32>
    %5 = vector.extract_strided_slice %4 {offsets = [0, 0], sizes = [128, 32], strides = [1, 1]} : vector<128x64xf32> to vector<128x32xf32>
    %c0_3 = arith.constant 0 : index
    %c0_4 = arith.constant 0 : index
    %6 = vector.load %arg2[%c0_3, %c0_4] : memref<32x96xf32, #tpu.memory_space<vmem>>, vector<32x96xf32>
    %cst_5 = arith.constant dense<0.000000e+00> : vector<128x96xf32>
    %7 = tpu.matmul %5, %6, %cst_5 {dimension_numbers = #tpu.dot_dimension_numbers<[1], [0], [0], [1], [0, 0, 1, 1], [], []>} : vector<128x32xf32>, vector<32x96xf32>, vector<128x96xf32> -> vector<128x96xf32>
    %c0_6 = arith.constant 0 : index
    %c0_7 = arith.constant 0 : index
    %8 = vector.load %arg3[%c0_6, %c0_7] : memref<1x96xf32, #tpu.memory_space<vmem>>, vector<1x96xf32>
    %9 = vector.broadcast %8 : vector<1x96xf32> to vector<128x96xf32>
    %10 = arith.addf %7, %9 : vector<128x96xf32>
    %11 = vector.extract_strided_slice %10 {offsets = [0, 0], sizes = [128, 32], strides = [1, 1]} : vector<128x96xf32> to vector<128x32xf32>
    %12 = vector.extract_strided_slice %10 {offsets = [0, 32], sizes = [128, 32], strides = [1, 1]} : vector<128x96xf32> to vector<128x32xf32>
    %13 = vector.extract_strided_slice %10 {offsets = [0, 64], sizes = [128, 32], strides = [1, 1]} : vector<128x96xf32> to vector<128x32xf32>
    %cst_8 = arith.constant dense<0.000000e+00> : vector<128x128xf32>
    %14 = tpu.matmul %11, %12, %cst_8 {dimension_numbers = #tpu.dot_dimension_numbers<[1], [1], [0], [0], [0, 0, 1, 0], [], []>} : vector<128x32xf32>, vector<128x32xf32>, vector<128x128xf32> -> vector<128x128xf32>
    %cst_9 = arith.constant dense<0xFF800000> : vector<128xf32>
    %15 = vector.multi_reduction <maximumf>, %14, %cst_9 [1] : vector<128x128xf32> to vector<128xf32>
    %16 = vector.shape_cast %15 : vector<128xf32> to vector<128x1xf32>
    %17 = vector.broadcast %16 : vector<128x1xf32> to vector<128x128xf32>
    %18 = arith.subf %14, %17 : vector<128x128xf32>
    %19 = math.exp %18 : vector<128x128xf32>
    %cst_10 = arith.constant dense<0.000000e+00> : vector<128xf32>
    %20 = vector.multi_reduction <add>, %19, %cst_10 [1] : vector<128x128xf32> to vector<128xf32>
    %21 = vector.shape_cast %20 : vector<128xf32> to vector<128x1xf32>
    %22 = tpu.reciprocal %21 {approx = true} : vector<128x1xf32> -> vector<128x1xf32>
    %23 = vector.broadcast %22 : vector<128x1xf32> to vector<128x128xf32>
    %24 = arith.mulf %19, %23 : vector<128x128xf32>
    %cst_11 = arith.constant dense<0.000000e+00> : vector<128x32xf32>
    %25 = tpu.matmul %24, %13, %cst_11 {dimension_numbers = #tpu.dot_dimension_numbers<[1], [0], [0], [1], [0, 0, 1, 1], [], []>} : vector<128x128xf32>, vector<128x32xf32>, vector<128x32xf32> -> vector<128x32xf32>
    %c0_12 = arith.constant 0 : index
    %c0_13 = arith.constant 0 : index
    %26 = vector.load %arg4[%c0_12, %c0_13] : memref<32x32xf32, #tpu.memory_space<vmem>>, vector<32x32xf32>
    %cst_14 = arith.constant dense<0.000000e+00> : vector<128x32xf32>
    %27 = tpu.matmul %25, %26, %cst_14 {dimension_numbers = #tpu.dot_dimension_numbers<[1], [0], [0], [1], [0, 0, 1, 1], [], []>} : vector<128x32xf32>, vector<32x32xf32>, vector<128x32xf32> -> vector<128x32xf32>
    %c0_15 = arith.constant 0 : index
    %c0_16 = arith.constant 0 : index
    %28 = vector.load %arg5[%c0_15, %c0_16] : memref<1x32xf32, #tpu.memory_space<vmem>>, vector<1x32xf32>
    %29 = vector.broadcast %28 : vector<1x32xf32> to vector<128x32xf32>
    %30 = arith.addf %27, %29 : vector<128x32xf32>
    %31 = arith.addf %5, %30 : vector<128x32xf32>
    %32 = vector.shape_cast %31 : vector<128x32xf32> to vector<2x64x32xf32>
    %33 = arith.mulf %32, %32 : vector<2x64x32xf32>
    %cst_17 = arith.constant dense<0.000000e+00> : vector<2x64xf32>
    %34 = vector.multi_reduction <add>, %33, %cst_17 [2] : vector<2x64x32xf32> to vector<2x64xf32>
    %35 = vector.shape_cast %34 : vector<2x64xf32> to vector<2x64x1xf32>
    %cst_18 = arith.constant dense<0.000000e+00> : vector<2x1xf32>
    %36 = vector.multi_reduction <add>, %35, %cst_18 [1] : vector<2x64x1xf32> to vector<2x1xf32>
    %37 = vector.shape_cast %36 : vector<2x1xf32> to vector<2x1x1xf32>
    %cst_19 = arith.constant 9.99999974E-6 : f32
    %38 = vector.broadcast %cst_19 : f32 to vector<2x1x1xf32>
    %39 = arith.addf %37, %38 : vector<2x1x1xf32>
    %40 = math.rsqrt %39 : vector<2x1x1xf32>
    %cst_20 = arith.constant 2.000000e+00 : f32
    %41 = vector.broadcast %cst_20 : f32 to vector<2x1x1xf32>
    %42 = arith.mulf %41, %40 : vector<2x1x1xf32>
    %43 = vector.broadcast %42 : vector<2x1x1xf32> to vector<2x64x32xf32>
    %44 = arith.mulf %32, %43 : vector<2x64x32xf32>
    %45 = vector.shape_cast %44 : vector<2x64x32xf32> to vector<128x32xf32>
    %46 = vector.extract_strided_slice %4 {offsets = [0, 32], sizes = [128, 32], strides = [1, 1]} : vector<128x64xf32> to vector<128x32xf32>
    %c0_21 = arith.constant 0 : index
    %c0_22 = arith.constant 0 : index
    %47 = vector.load %arg2[%c0_21, %c0_22] : memref<32x96xf32, #tpu.memory_space<vmem>>, vector<32x96xf32>
    %cst_23 = arith.constant dense<0.000000e+00> : vector<128x96xf32>
    %48 = tpu.matmul %46, %47, %cst_23 {dimension_numbers = #tpu.dot_dimension_numbers<[1], [0], [0], [1], [0, 0, 1, 1], [], []>} : vector<128x32xf32>, vector<32x96xf32>, vector<128x96xf32> -> vector<128x96xf32>
    %c0_24 = arith.constant 0 : index
    %c0_25 = arith.constant 0 : index
    %49 = vector.load %arg3[%c0_24, %c0_25] : memref<1x96xf32, #tpu.memory_space<vmem>>, vector<1x96xf32>
    %50 = vector.broadcast %49 : vector<1x96xf32> to vector<128x96xf32>
    %51 = arith.addf %48, %50 : vector<128x96xf32>
    %52 = vector.extract_strided_slice %51 {offsets = [0, 0], sizes = [128, 32], strides = [1, 1]} : vector<128x96xf32> to vector<128x32xf32>
    %53 = vector.extract_strided_slice %51 {offsets = [0, 32], sizes = [128, 32], strides = [1, 1]} : vector<128x96xf32> to vector<128x32xf32>
    %54 = vector.extract_strided_slice %51 {offsets = [0, 64], sizes = [128, 32], strides = [1, 1]} : vector<128x96xf32> to vector<128x32xf32>
    %cst_26 = arith.constant dense<0.000000e+00> : vector<128x128xf32>
    %55 = tpu.matmul %52, %53, %cst_26 {dimension_numbers = #tpu.dot_dimension_numbers<[1], [1], [0], [0], [0, 0, 1, 0], [], []>} : vector<128x32xf32>, vector<128x32xf32>, vector<128x128xf32> -> vector<128x128xf32>
    %cst_27 = arith.constant dense<0xFF800000> : vector<128xf32>
    %56 = vector.multi_reduction <maximumf>, %55, %cst_27 [1] : vector<128x128xf32> to vector<128xf32>
    %57 = vector.shape_cast %56 : vector<128xf32> to vector<128x1xf32>
    %58 = vector.broadcast %57 : vector<128x1xf32> to vector<128x128xf32>
    %59 = arith.subf %55, %58 : vector<128x128xf32>
    %60 = math.exp %59 : vector<128x128xf32>
    %cst_28 = arith.constant dense<0.000000e+00> : vector<128xf32>
    %61 = vector.multi_reduction <add>, %60, %cst_28 [1] : vector<128x128xf32> to vector<128xf32>
    %62 = vector.shape_cast %61 : vector<128xf32> to vector<128x1xf32>
    %63 = tpu.reciprocal %62 {approx = true} : vector<128x1xf32> -> vector<128x1xf32>
    %64 = vector.broadcast %63 : vector<128x1xf32> to vector<128x128xf32>
    %65 = arith.mulf %60, %64 : vector<128x128xf32>
    %cst_29 = arith.constant dense<0.000000e+00> : vector<128x32xf32>
    %66 = tpu.matmul %65, %54, %cst_29 {dimension_numbers = #tpu.dot_dimension_numbers<[1], [0], [0], [1], [0, 0, 1, 1], [], []>} : vector<128x128xf32>, vector<128x32xf32>, vector<128x32xf32> -> vector<128x32xf32>
    %c0_30 = arith.constant 0 : index
    %c0_31 = arith.constant 0 : index
    %67 = vector.load %arg4[%c0_30, %c0_31] : memref<32x32xf32, #tpu.memory_space<vmem>>, vector<32x32xf32>
    %cst_32 = arith.constant dense<0.000000e+00> : vector<128x32xf32>
    %68 = tpu.matmul %66, %67, %cst_32 {dimension_numbers = #tpu.dot_dimension_numbers<[1], [0], [0], [1], [0, 0, 1, 1], [], []>} : vector<128x32xf32>, vector<32x32xf32>, vector<128x32xf32> -> vector<128x32xf32>
    %c0_33 = arith.constant 0 : index
    %c0_34 = arith.constant 0 : index
    %69 = vector.load %arg5[%c0_33, %c0_34] : memref<1x32xf32, #tpu.memory_space<vmem>>, vector<1x32xf32>
    %70 = vector.broadcast %69 : vector<1x32xf32> to vector<128x32xf32>
    %71 = arith.addf %68, %70 : vector<128x32xf32>
    %72 = arith.addf %46, %71 : vector<128x32xf32>
    %73 = vector.shape_cast %72 : vector<128x32xf32> to vector<2x64x32xf32>
    %74 = arith.mulf %73, %73 : vector<2x64x32xf32>
    %cst_35 = arith.constant dense<0.000000e+00> : vector<2x64xf32>
    %75 = vector.multi_reduction <add>, %74, %cst_35 [2] : vector<2x64x32xf32> to vector<2x64xf32>
    %76 = vector.shape_cast %75 : vector<2x64xf32> to vector<2x64x1xf32>
    %cst_36 = arith.constant dense<0.000000e+00> : vector<2x1xf32>
    %77 = vector.multi_reduction <add>, %76, %cst_36 [1] : vector<2x64x1xf32> to vector<2x1xf32>
    %78 = vector.shape_cast %77 : vector<2x1xf32> to vector<2x1x1xf32>
    %cst_37 = arith.constant 9.99999974E-6 : f32
    %79 = vector.broadcast %cst_37 : f32 to vector<2x1x1xf32>
    %80 = arith.addf %78, %79 : vector<2x1x1xf32>
    %81 = math.rsqrt %80 : vector<2x1x1xf32>
    %cst_38 = arith.constant 2.000000e+00 : f32
    %82 = vector.broadcast %cst_38 : f32 to vector<2x1x1xf32>
    %83 = arith.mulf %82, %81 : vector<2x1x1xf32>
    %84 = vector.broadcast %83 : vector<2x1x1xf32> to vector<2x64x32xf32>
    %85 = arith.mulf %73, %84 : vector<2x64x32xf32>
    %86 = vector.shape_cast %85 : vector<2x64x32xf32> to vector<128x32xf32>
    %87 = tpu.concatenate %45, %86 in 1 : vector<128x32xf32>, vector<128x32xf32> -> vector<128x64xf32>
    %c0_39 = arith.constant 0 : index
    %c0_40 = arith.constant 0 : index
    %88 = vector.load %arg6[%c0_39, %c0_40] : memref<128x64xf32, #tpu.memory_space<vmem>>, vector<128x64xf32>
    tpu.vector_store %arg6[%c0_39, %c0_40], %87 {strides = array<i32>} : memref<128x64xf32, #tpu.memory_space<vmem>>, vector<128x64xf32>,
    return
  }
}

</mosaic_0001>

<bundles_post_ra>
// kernel: tpu_custom_call.1
= control target key start
LH: loop header
LB: loop body
LE: loop exit
PB: predicated region body
PF: predicated region fallthrough
CT: control target
= control target key end

     0   :  { %vm98_vm0 = vcmask 261120   ;;  %s3706_s28 = smov 32   ;;  %vm2486_vm2 = vcmask 523264   ;;  %s5063_s2 = inlined_call_operand.vmem [shape: f32[32,96], index: 2, kind: input, shape index: {}]   ;;  %s5064_s0 = inlined_call_operand.vmem [shape: f32[128,64], index: 0, kind: input, shape index: {}]   ;;  %s5065_s1 = inlined_call_operand.vmem [shape: f32[128,64], index: 1, kind: input, shape index: {}]   ;;  %s5066_s3 = inlined_call_operand.vmem [shape: f32[1,96], index: 3, kind: input, shape index: {}]   ;;  %s5067_s4 = inlined_call_operand.vmem [shape: f32[32,32], index: 4, kind: input, shape index: {}]   ;;  %s5068_s5 = inlined_call_operand.vmem [shape: f32[1,32], index: 5, kind: input, shape index: {}]   ;;  %s5069_s6 = inlined_call_operand.vmem [shape: f32[128,64], index: 6, kind: output, shape index: {}]  }
   0x1   :  { %v87_v0 = vld [vmem:[%s5063_s2] sm:$0xff]  ;;  %v88_v1 = vld [vmem:[%s5063_s2 + $0x8] sm:$0xff]  ;;  %v89_v2 = vld [vmem:[%s5063_s2 + $0x10] sm:$0xff] }
   0x2   :  { %v3751_v3 = vpack.c.bf16 %v88_v1, %v87_v0  ;;  %v90_v4 = vld [vmem:[%s5063_s2 + $0x18] sm:$0xff]  ;;  %v23_v5 = vld [vmem:[%s5064_s0] sm:$0xff]  ;;  %v40_v9 = vld [vmem:[%s5065_s1 + $0x8] sm:$0xff] }
   0x3   :  { %v39_v6 = vld [vmem:[%s5065_s1] sm:$0xff]  ;;  %v3762_v7 = vpack.c.bf16 %v90_v4, %v89_v2  ;;  %v56_v10 = vmul.f32 0.001, %v40_v9  ;;  %v41_v11 = vld [vmem:[%s5065_s1 + $0x10] sm:$0xff]  ;;  %v24_v13 = vld [vmem:[%s5064_s0 + $0x8] sm:$0xff] }
   0x4   :  { %v55_v8 = vmul.f32 0.001, %v39_v6  ;;  %3198 = vmatprep.subr.bf16.mxu0 %v3751_v3  ;;  %v57_v14 = vmul.f32 0.001, %v41_v11  ;;  %v42_v15 = vld [vmem:[%s5065_s1 + $0x18] sm:$0xff]  ;;  %v25_v16 = vld [vmem:[%s5064_s0 + $0x10] sm:$0xff]  ;;  %vm4039_vm1 = vmpackc.low %vm98_vm0, %vm98_vm0 }
   0x5   :  { %3200 = vmatpush3.bf16.msra.mxu0 %v3751_v3  ;;  %v43_v17 = vld [vmem:[%s5065_s1 + $0x20] sm:$0xff]  ;;  %v3789_v18 = vadd.f32 %v56_v10, %v24_v13  ;;  %v58_v19 = vmul.f32 0.001, %v42_v15  ;;  %v26_v21 = vld [vmem:[%s5064_s0 + $0x18] sm:$0xff]  ;;  %v44_v23 = vld [vmem:[%s5065_s1 + $0x28] sm:$0xff] }
   0x6   :  { %v3772_v12 = vadd.f32 %v55_v8, %v23_v5  ;;  %3202 = vmatprep.subr.bf16.mxu0 %v3762_v7  ;;  %v3792_v20 = vadd.f32 %v57_v14, %v25_v16  ;;  %v59_v22 = vmul.f32 0.001, %v43_v17  ;;  %v27_v24 = vld [vmem:[%s5064_s0 + $0x20] sm:$0xff]  ;;  %v45_v25 = vld [vmem:[%s5065_s1 + $0x30] sm:$0xff]  ;;  %v60_v27 = vmul.f32 0.001, %v44_v23 }
   0x7   :  { %v3808_v26 = vadd.f32 %v58_v19, %v26_v21  ;;  %v28_v29 = vld [vmem:[%s5064_s0 + $0x28] sm:$0xff]  ;;  %v61_v30 = vmul.f32 0.001, %v45_v25  ;;  %v46_v31 = vld [vmem:[%s5065_s1 + $0x38] sm:$0xff]  ;;  %v29_v32 = vld [vmem:[%s5064_s0 + $0x30] sm:$0xff] }
   0x8   :  { %2853 = vmatprep.mubr.msk.f32.mxu0 %vm98_vm0, %v3772_v12  ;;  %v3812_v28 = vadd.f32 %v59_v22, %v27_v24  ;;  %v47_v33 = vld [vmem:[%s5065_s1 + $0x40] sm:$0xff]  ;;  %v3828_v34 = vadd.f32 %v60_v27, %v28_v29  ;;  %v62_v35 = vmul.f32 0.001, %v46_v31  ;;  %v30_v37 = vld [vmem:[%s5064_s0 + $0x38] sm:$0xff]  ;;  %v48_v39 = vld [vmem:[%s5065_s1 + $0x48] sm:$0xff] }
   0x9   :  { %3204 = vmatpush3.bf16.msra.mxu0 %v3762_v7  ;;  %v3832_v36 = vadd.f32 %v61_v30, %v29_v32  ;;  %v63_v38 = vmul.f32 0.001, %v47_v33  ;;  %v31_v40 = vld [vmem:[%s5064_s0 + $0x40] sm:$0xff]  ;;  %v49_v41 = vld [vmem:[%s5065_s1 + $0x50] sm:$0xff]  ;;  %v64_v43 = vmul.f32 0.001, %v48_v39 }
   0xa   :  { %5092 = vst [vmem:[#allocation2_spill] sm:$0xff] %v3812_v28  ;;  %5093 = vst [vmem:[#allocation3_spill] sm:$0xff] %v3828_v34  ;;  %v3848_v42 = vadd.f32 %v62_v35, %v30_v37  ;;  %v32_v45 = vld [vmem:[%s5064_s0 + $0x48] sm:$0xff]  ;;  %v65_v46 = vmul.f32 0.001, %v49_v41  ;;  %v50_v47 = vld [vmem:[%s5065_s1 + $0x58] sm:$0xff] }
   0xb   :  { %5094 = vst [vmem:[#allocation4_spill] sm:$0xff] %v3832_v36  ;;  %v3852_v44 = vadd.f32 %v63_v38, %v31_v40  ;;  %v33_v48 = vld [vmem:[%s5064_s0 + $0x50] sm:$0xff]  ;;  %v51_v49 = vld [vmem:[%s5065_s1 + $0x60] sm:$0xff]  ;;  %v3868_v50 = vadd.f32 %v64_v43, %v32_v45  ;;  %v66_v51 = vmul.f32 0.001, %v50_v47  ;;  %v34_v53 = vld [vmem:[%s5064_s0 + $0x58] sm:$0xff] }
   0xc   :  { %2854 = vmatmul.mubr.msk.f32.vlgmr.msra.gmra.mrb[0].mxu0 %vm98_vm0, %v3789_v18  ;;  %5095 = vst [vmem:[#allocation5_spill] sm:$0xff] %v3848_v42  ;;  %v3872_v52 = vadd.f32 %v65_v46, %v33_v48  ;;  %v67_v54 = vmul.f32 0.001, %v51_v49  ;;  %v52_v55 = vld [vmem:[%s5065_s1 + $0x68] sm:$0xff]  ;;  %v35_v56 = vld [vmem:[%s5064_s0 + $0x60] sm:$0xff]  ;;  %v53_v57 = vld [vmem:[%s5065_s1 + $0x70] sm:$0xff] }
   0xd   :  { %2856 = vmatprep.mubr.msk.f32.mxu0 %vm98_vm0, %v3792_v20  ;;  %5096 = vst [vmem:[#allocation6_spill] sm:$0xff] %v3868_v50  ;;  %v3888_v58 = vadd.f32 %v66_v51, %v34_v53  ;;  %v68_v59 = vmul.f32 0.001, %v52_v55  ;;  %v36_v61 = vld [vmem:[%s5064_s0 + $0x68] sm:$0xff]  ;;  %v69_v62 = vmul.f32 0.001, %v53_v57 }
   0xe   :  { %5097 = vst [vmem:[#allocation7_spill] sm:$0xff] %v3872_v52  ;;  %v3892_v60 = vadd.f32 %v67_v54, %v35_v56  ;;  %v54_v63 = vld [vmem:[%s5065_s1 + $0x78] sm:$0xff]  ;;  %v37_v0 = vld [vmem:[%s5064_s0 + $0x70] sm:$0xff]  ;;  %v3925_v8 = vld [vmem:[%s5066_s3] ss:$0 sm:$0xff]  ;;  %s3705_s3 = smov 64  }
   0xf   :  { %5098 = vst [vmem:[#allocation8_spill] sm:$0xff] %v3888_v58  ;;  %v3905_v1 = vadd.f32 %v68_v59, %v36_v61  ;;  %v70_v2 = vmul.f32 0.001, %v54_v63  ;;  %v3909_v4 = vadd.f32 %v69_v62, %v37_v0  ;;  %v38_v5 = vld [vmem:[%s5064_s0 + $0x78] sm:$0xff]  ;;  %s3704_s0 = smov 96  }
  0x10   :  { %2857 = vmatmul.mubr.msk.f32.gmra.mrb[2].mxu0 %vm98_vm0, %v3808_v26  ;;  %5099 = vst [vmem:[#allocation9_spill] sm:$0xff] %v3892_v60 }
  0x11   :  { %2859 = vmatprep.mubr.msk.f32.mxu0 %vm98_vm0, %v3812_v28  ;;  %5100 = vst [vmem:[#allocation10_spill] sm:$0xff] %v3905_v1  ;;  %5101 = vst [vmem:[#allocation11_spill] sm:$0xff] %v3909_v4  ;;  %v3916_v6 = vadd.f32 %v70_v2, %v38_v5 }
  0x13   :  { %5102 = vst [vmem:[#allocation12_spill] sm:$0xff] %v3916_v6 }
  0x14   :  { %2860 = vmatmul.mubr.msk.f32.gmra.mrb[4].mxu0 %vm98_vm0, %v3828_v34 }
  0x15   :  { %2862 = vmatprep.mubr.msk.f32.mxu0 %vm98_vm0, %v3832_v36 }
  0x18   :  { %2863 = vmatmul.mubr.msk.f32.gmra.mrb[6].mxu0 %vm98_vm0, %v3848_v42 }
  0x19   :  { %2865 = vmatprep.mubr.msk.f32.mxu0 %vm98_vm0, %v3852_v44 }
  0x1c   :  { %2866 = vmatmul.mubr.msk.f32.gmra.mrb[8].mxu0 %vm98_vm0, %v3868_v50 }
  0x1d   :  { %2868 = vmatprep.mubr.msk.f32.mxu0 %vm98_vm0, %v3872_v52 }
  0x20   :  { %2869 = vmatmul.mubr.msk.f32.gmra.mrb[10].mxu0 %vm98_vm0, %v3888_v58 }
  0x21   :  { %2871 = vmatprep.mubr.msk.f32.mxu0 %vm98_vm0, %v3892_v60 }
  0x24   :  { %2872 = vmatmul.mubr.msk.f32.gmra.mrb[12].mxu0 %vm98_vm0, %v3905_v1 }
  0x25   :  { %2874 = vmatprep.mubr.msk.f32.mxu0 %vm98_vm0, %v3909_v4 }
  0x28   :  { %2875 = vmatmul.mubr.msk.f32.gmra.mrb[14].mxu0 %vm98_vm0, %v3916_v6 }
  0xdf   :  { %v2855_v9 = vpop.f32.mrb[0].mxu0 }
  0xe0   :  { %v3928_v10 = vadd.f32 %v2855_v9, %v3925_v8  ;;  %v213_v11 = vpop.f32.mrb[1].mxu0 }
  0xe1   :  { %v214_v13 = vadd.f32 %v3925_v8, %v213_v11 }
  0xe3   :  { %2909 = vmatprep.mubr.msk.f32.mxu1 %vm98_vm0, %v214_v13  ;;  %v3408_v14 = vpack.i.bf16 %v3928_v10, %v214_v13  ;;  %v2858_v15 = vpop.f32.mrb[2].mxu0 }
  0xe4   :  { %v3934_v16 = vadd.f32 %v2858_v15, %v3925_v8  ;;  %v223_v17 = vpop.f32.mrb[3].mxu0 }
  0xe5   :  { %3409 = vrot.lane.b32.xlu0 %v3408_v14, %s3704_s0  ;;  %v3938_v19 = vadd.f32 %v3925_v8, %v223_v17 }
  0xe7   :  { %v3413_v21 = vpack.i.bf16 %v3934_v16, %v3938_v19  ;;  %v2861_v22 = vpop.f32.mrb[4].mxu0 }
  0xe8   :  { %v3943_v23 = vadd.f32 %v2861_v22, %v3925_v8  ;;  %v233_v24 = vpop.f32.mrb[5].mxu0 }
  0xe9   :  { %3414 = vrot.lane.b32.xlu0 %v3413_v21, %s3704_s0  ;;  %v3947_v25 = vadd.f32 %v3925_v8, %v233_v24 }
  0xeb   :  { %v2864_v27 = vpop.f32.mrb[6].mxu0  ;;  %v3418_v29 = vpack.i.bf16 %v3943_v23, %v3947_v25 }
  0xec   :  { %v3952_v30 = vadd.f32 %v2864_v27, %v3925_v8  ;;  %v243_v31 = vpop.f32.mrb[7].mxu0 }
  0xed   :  { %v3955_v32 = vadd.f32 %v3925_v8, %v243_v31  ;;  %3419 = vrot.lane.b32.xlu1 %v3418_v29, %s3704_s0 }
  0xef   :  { %v2867_v33 = vpop.f32.mrb[8].mxu0  ;;  %v3423_v35 = vpack.i.bf16 %v3952_v30, %v3955_v32 }
  0xf0   :  { %v3961_v37 = vadd.f32 %v2867_v33, %v3925_v8  ;;  %v253_v38 = vpop.f32.mrb[9].mxu0 }
  0xf1   :  { %v3964_v39 = vadd.f32 %v3925_v8, %v253_v38  ;;  %3424 = vrot.lane.b32.xlu1 %v3423_v35, %s3704_s0 }
  0xf3   :  { %v2870_v40 = vpop.f32.mrb[10].mxu0  ;;  %v3428_v41 = vpack.i.bf16 %v3961_v37, %v3964_v39 }
  0xf4   :  { %v3970_v43 = vadd.f32 %v2870_v40, %v3925_v8  ;;  %v263_v45 = vpop.f32.mrb[11].mxu0 }
  0xf5   :  { %v3973_v46 = vadd.f32 %v3925_v8, %v263_v45  ;;  %3429 = vrot.lane.b32.xlu0 %v3428_v41, %s3704_s0 }
  0xf7   :  { %v2873_v47 = vpop.f32.mrb[12].mxu0  ;;  %v3433_v48 = vpack.i.bf16 %v3970_v43, %v3973_v46 }
  0xf8   :  { %v3979_v49 = vadd.f32 %v2873_v47, %v3925_v8  ;;  %v273_v51 = vpop.f32.mrb[13].mxu0 }
  0xf9   :  { %v3982_v53 = vadd.f32 %v3925_v8, %v273_v51  ;;  %3434 = vrot.lane.b32.xlu1 %v3433_v48, %s3704_s0 }
  0xfb   :  { %v3987_v54 = vpack.i.bf16 %v3979_v49, %v3982_v53  ;;  %v2876_v55 = vpop.f32.mrb[14].mxu0 }
  0xfc   :  { %v3990_v56 = vadd.f32 %v2876_v55, %v3925_v8  ;;  %v283_v57 = vpop.f32.mrb[15].mxu0 }
  0xfd   :  { %3439 = vrot.lane.b32.xlu0 %v3987_v54, %s3704_s0  ;;  %v3995_v59 = vadd.f32 %v3925_v8, %v283_v57 }
  0xff   :  { %v3999_v61 = vpack.i.bf16 %v3990_v56, %v3995_v59 }
 0x101   :  { %1220 = vrot.lane.b32.xlu0 %v3789_v18, %s3704_s0  ;;  %3444 = vrot.lane.b32.xlu1 %v3999_v61, %s3704_s0 }
 0x105   :  { %1224 = vrot.lane.b32.xlu0 %v3808_v26, %s3704_s0  ;;  %1218 = vrot.lane.b32.xlu1 %v3772_v12, %s3704_s0 }
 0x109   :  { %1230 = vrot.lane.b32.xlu0 %v3832_v36, %s3704_s0  ;;  %1222 = vrot.lane.b32.xlu1 %v3792_v20, %s3704_s0 }
 0x10d   :  { %3449 = vrot.lane.b32.xlu0 %v3408_v14, %s3705_s3  ;;  %1226 = vrot.lane.b32.xlu1 %v3812_v28, %s3704_s0 }
 0x111   :  { %3454 = vrot.lane.b32.xlu0 %v3413_v21, %s3705_s3  ;;  %1228 = vrot.lane.b32.xlu1 %v3828_v34, %s3704_s0 }
 0x115   :  { %3459 = vrot.lane.b32.xlu0 %v3418_v29, %s3705_s3  ;;  %1232 = vrot.lane.b32.xlu1 %v3848_v42, %s3704_s0 }
 0x119   :  { %3464 = vrot.lane.b32.xlu0 %v3423_v35, %s3705_s3  ;;  %1234 = vrot.lane.b32.xlu1 %v3852_v44, %s3704_s0 }
 0x11d   :  { %3469 = vrot.lane.b32.xlu0 %v3428_v41, %s3705_s3  ;;  %1236 = vrot.lane.b32.xlu1 %v3868_v50, %s3704_s0 }
 0x121   :  { %3474 = vrot.lane.b32.xlu0 %v3433_v48, %s3705_s3  ;;  %1238 = vrot.lane.b32.xlu1 %v3872_v52, %s3704_s0 }
 0x125   :  { %1240 = vrot.lane.b32.xlu1 %v3888_v58, %s3704_s0 }
 0x129   :  { %1242 = vrot.lane.b32.xlu1 %v3892_v60, %s3704_s0 }
 0x12d   :  { %1244 = vrot.lane.b32.xlu1 %v3905_v1, %s3704_s0 }
 0x157   :  { %v3410_v62 = vpop.permute.xlu0 %3409 }
 0x158   :  { %v3412_v63 = vunpack.i.h.bf16 %v3410_v62  ;;  %v3411_v0 = vunpack.i.l.bf16 %v3410_v62 }
 0x15a   :  { %v3205_v5 = vpack.c.bf16 %v3412_v63, %v3411_v0 }
 0x15b   :  { %v3415_v9 = vpop.permute.xlu0 %3414 }
 0x15c   :  { %3207 = vmatprep.subr.msk.bf16.mxu1 %vm4039_vm1, %v3205_v5  ;;  %v3417_v11 = vunpack.i.h.bf16 %v3415_v9  ;;  %v3416_v13 = vunpack.i.l.bf16 %v3415_v9 }
 0x15d   :  { %3210 = vmatpush3.bf16.xpose.msk.msra.mxu1 %vm4039_vm1, %v3205_v5 }
 0x15e   :  { %v3211_v14 = vpack.c.bf16 %v3417_v11, %v3416_v13 }
 0x15f   :  { %v3420_v15 = vpop.permute.xlu1 %3419 }
 0x160   :  { %3213 = vmatprep.subr.msk.bf16.mxu1 %vm4039_vm1, %v3211_v14  ;;  %v3422_v17 = vunpack.i.h.bf16 %v3420_v15  ;;  %v3421_v21 = vunpack.i.l.bf16 %v3420_v15 }
 0x162   :  { %v3217_v22 = vpack.c.bf16 %v3422_v17, %v3421_v21 }
 0x163   :  { %v3425_v24 = vpop.permute.xlu1 %3424 }
 0x164   :  { %v3427_v27 = vunpack.i.h.bf16 %v3425_v24  ;;  %v3426_v29 = vunpack.i.l.bf16 %v3425_v24 }
 0x165   :  { %3216 = vmatpush3.bf16.xpose.msk.msra.mxu1 %vm4039_vm1, %v3211_v14 }
 0x166   :  { %3219 = vmatprep.subr.msk.bf16.mxu1 %vm4039_vm1, %v3217_v22  ;;  %v3223_v33 = vpack.c.bf16 %v3427_v27, %v3426_v29 }
 0x167   :  { %v3430_v31 = vpop.permute.xlu0 %3429 }
 0x168   :  { %v3432_v35 = vunpack.i.h.bf16 %v3430_v31  ;;  %v3431_v38 = vunpack.i.l.bf16 %v3430_v31 }
 0x16a   :  { %v3229_v41 = vpack.c.bf16 %v3432_v35, %v3431_v38 }
 0x16b   :  { %v3435_v47 = vpop.permute.xlu1 %3434 }
 0x16c   :  { %v3437_v48 = vunpack.i.h.bf16 %v3435_v47  ;;  %v3436_v51 = vunpack.i.l.bf16 %v3435_v47 }
 0x16d   :  { %3222 = vmatpush3.bf16.xpose.msk.msra.mxu1 %vm4039_vm1, %v3217_v22 }
 0x16e   :  { %3225 = vmatprep.subr.msk.bf16.mxu1 %vm4039_vm1, %v3223_v33  ;;  %v3235_v57 = vpack.c.bf16 %v3437_v48, %v3436_v51 }
 0x16f   :  { %v3440_v40 = vpop.permute.xlu0 %3439 }
 0x170   :  { %v3442_v63 = vunpack.i.h.bf16 %v3440_v40  ;;  %v3441_v0 = vunpack.i.l.bf16 %v3440_v40 }
 0x172   :  { %v3241_v13 = vpack.c.bf16 %v3442_v63, %v3441_v0 }
 0x173   :  { %v4057_v45 = vpop.permute.xlu0 %1220  ;;  %v3445_v17 = vpop.permute.xlu1 %3444 }
 0x174   :  { %v3447_v27 = vunpack.i.h.bf16 %v3445_v17  ;;  %v3446_v29 = vunpack.i.l.bf16 %v3445_v17 }
 0x175   :  { %3228 = vmatpush3.bf16.xpose.msk.msra.mxu1 %vm4039_vm1, %v3223_v33 }
 0x176   :  { %3231 = vmatprep.subr.msk.bf16.mxu1 %vm4039_vm1, %v3229_v41  ;;  %v3247_v40 = vpack.c.bf16 %v3447_v27, %v3446_v29 }
 0x177   :  { %v4063_v55 = vpop.permute.xlu0 %1224 }
 0x17b   :  { %v4065_v62 = vpop.permute.xlu0 %1230 }
 0x17d   :  { %3234 = vmatpush3.bf16.xpose.msk.msra.mxu1 %vm4039_vm1, %v3229_v41 }
 0x17e   :  { %3237 = vmatprep.subr.msk.bf16.mxu1 %vm4039_vm1, %v3235_v57 }
 0x17f   :  { %v3450_v5 = vpop.permute.xlu0 %3449 }
 0x180   :  { %v3452_v9 = vunpack.i.h.bf16 %v3450_v5  ;;  %v3451_v11 = vunpack.i.l.bf16 %v3450_v5 }
 0x182   :  { %v3253_v14 = vpack.c.bf16 %v3452_v9, %v3451_v11 }
 0x183   :  { %v3455_v15 = vpop.permute.xlu0 %3454 }
 0x184   :  { %v3457_v21 = vunpack.i.h.bf16 %v3455_v15  ;;  %v3456_v22 = vunpack.i.l.bf16 %v3455_v15  ;;  %3254 = vmatprep.subr.bf16.mxu0 %v3253_v14 }
 0x185   :  { %3240 = vmatpush3.bf16.xpose.msk.msra.mxu1 %vm4039_vm1, %v3235_v57  ;;  %3256 = vmatpush3.bf16.msra.mxu0 %v3253_v14 }
 0x186   :  { %v3257_v24 = vpack.c.bf16 %v3457_v21, %v3456_v22  ;;  %3243 = vmatprep.subr.msk.bf16.mxu1 %vm4039_vm1, %v3241_v13 }
 0x187   :  { %v3460_v31 = vpop.permute.xlu0 %3459 }
 0x188   :  { %v3462_v33 = vunpack.i.h.bf16 %v3460_v31  ;;  %v3461_v35 = vunpack.i.l.bf16 %v3460_v31  ;;  %3258 = vmatprep.subr.bf16.mxu0 %v3257_v24 }
 0x189   :  { %3260 = vmatpush3.bf16.msra.mxu0 %v3257_v24 }
 0x18a   :  { %v3261_v38 = vpack.c.bf16 %v3462_v33, %v3461_v35 }
 0x18b   :  { %v3465_v41 = vpop.permute.xlu0 %3464 }
 0x18c   :  { %v3467_v47 = vunpack.i.h.bf16 %v3465_v41  ;;  %v3466_v48 = vunpack.i.l.bf16 %v3465_v41  ;;  %3262 = vmatprep.subr.bf16.mxu0 %v3261_v38 }
 0x18d   :  { %3246 = vmatpush3.bf16.xpose.msk.msra.mxu1 %vm4039_vm1, %v3241_v13  ;;  %3264 = vmatpush3.bf16.msra.mxu0 %v3261_v38 }
 0x18e   :  { %v3265_v51 = vpack.c.bf16 %v3467_v47, %v3466_v48  ;;  %3249 = vmatprep.subr.msk.bf16.mxu1 %vm4039_vm1, %v3247_v40 }
 0x18f   :  { %v3470_v57 = vpop.permute.xlu0 %3469 }
 0x190   :  { %v3472_v63 = vunpack.i.h.bf16 %v3470_v57  ;;  %v3471_v0 = vunpack.i.l.bf16 %v3470_v57  ;;  %3266 = vmatprep.subr.bf16.mxu0 %v3265_v51 }
 0x191   :  { %3268 = vmatpush3.bf16.msra.mxu0 %v3265_v51 }
 0x192   :  { %v3269_v5 = vpack.c.bf16 %v3472_v63, %v3471_v0 }
 0x193   :  { %v3475_v9 = vpop.permute.xlu0 %3474 }
 0x194   :  { %v3477_v11 = vunpack.i.h.bf16 %v3475_v9  ;;  %v3476_v14 = vunpack.i.l.bf16 %v3475_v9  ;;  %3270 = vmatprep.subr.bf16.mxu0 %v3269_v5 }
 0x195   :  { %3252 = vmatpush3.bf16.xpose.msk.msra.mxu1 %vm4039_vm1, %v3247_v40  ;;  %3272 = vmatpush3.bf16.msra.mxu0 %v3269_v5 }
 0x196   :  { %v3273_v13 = vpack.c.bf16 %v3477_v11, %v3476_v14  ;;  %3294 = vmatprep.subr.bf16.mxu1 %v3751_v3 }
 0x198   :  { %3274 = vmatprep.subr.bf16.mxu0 %v3273_v13 }
 0x199   :  { %3276 = vmatpush3.bf16.msra.mxu0 %v3273_v13 }
 0x19c   :  { %2910 = vmatmul.mubr.msk.f32.vlgmr.msra.gmra.mrb[0].mxu1 %vm98_vm0, %v3928_v10 }
 0x19d   :  { %2912 = vmatprep.mubr.msk.f32.mxu1 %vm98_vm0, %v3938_v19  ;;  %3296 = vmatpush3.bf16.msra.mxu1 %v3751_v3  ;;  %v1219_v3 = vpop.permute.xlu1 %1218 }
 0x19e   :  { %3298 = vmatprep.subr.bf16.mxu1 %v3762_v7 }
 0x1a0   :  { %2913 = vmatmul.mubr.msk.f32.gmra.mrb[2].mxu1 %vm98_vm0, %v3934_v16 }
 0x1a1   :  { %2915 = vmatprep.mubr.msk.f32.mxu1 %vm98_vm0, %v3947_v25  ;;  %3300 = vmatpush3.bf16.msra.mxu1 %v3762_v7  ;;  %v1223_v7 = vpop.permute.xlu1 %1222 }
 0x1a4   :  { %2916 = vmatmul.mubr.msk.f32.gmra.mrb[4].mxu1 %vm98_vm0, %v3943_v23 }
 0x1a5   :  { %2918 = vmatprep.mubr.msk.f32.mxu1 %vm98_vm0, %v3955_v32  ;;  %v1227_v10 = vpop.permute.xlu1 %1226 }
 0x1a8   :  { %2919 = vmatmul.mubr.msk.f32.gmra.mrb[6].mxu1 %vm98_vm0, %v3952_v30 }
 0x1a9   :  { %2921 = vmatprep.mubr.msk.f32.mxu1 %vm98_vm0, %v3964_v39  ;;  %v1229_v16 = vpop.permute.xlu1 %1228 }
 0x1ac   :  { %2922 = vmatmul.mubr.msk.f32.gmra.mrb[8].mxu1 %vm98_vm0, %v3961_v37 }
 0x1ad   :  { %2924 = vmatprep.mubr.msk.f32.mxu1 %vm98_vm0, %v3973_v46  ;;  %v1233_v19 = vpop.permute.xlu1 %1232 }
 0x1b0   :  { %2925 = vmatmul.mubr.msk.f32.gmra.mrb[10].mxu1 %vm98_vm0, %v3970_v43 }
 0x1b1   :  { %2927 = vmatprep.mubr.msk.f32.mxu1 %vm98_vm0, %v3982_v53  ;;  %v1235_v23 = vpop.permute.xlu1 %1234 }
 0x1b4   :  { %2928 = vmatmul.mubr.msk.f32.gmra.mrb[12].mxu1 %vm98_vm0, %v3979_v49 }
 0x1b5   :  { %2930 = vmatprep.mubr.msk.f32.mxu1 %vm98_vm0, %v3995_v59  ;;  %v1237_v25 = vpop.permute.xlu1 %1236 }
 0x1b8   :  { %2931 = vmatmul.mubr.msk.f32.gmra.mrb[14].mxu1 %vm98_vm0, %v3990_v56 }
 0x1b9   :  { %3029 = vmatprep.mubr.msk.f32.mxu1 %vm98_vm0, %v1219_v3  ;;  %v1239_v30 = vpop.permute.xlu1 %1238 }
 0x1bc   :  { %3030 = vmatmul.mubr.msk.f32.vlgmr.msra.gmra.mrb[16].mxu1 %vm98_vm0, %v4057_v45 }
 0x1bd   :  { %3032 = vmatprep.mubr.msk.f32.mxu1 %vm98_vm0, %v1223_v7  ;;  %v1241_v32 = vpop.permute.xlu1 %1240 }
 0x1c0   :  { %3033 = vmatmul.mubr.msk.f32.gmra.mrb[18].mxu1 %vm98_vm0, %v4063_v55 }
 0x1c1   :  { %3035 = vmatprep.mubr.msk.f32.mxu1 %vm98_vm0, %v1227_v10  ;;  %v1243_v37 = vpop.permute.xlu1 %1242 }
 0x1c4   :  { %3036 = vmatmul.mubr.msk.f32.gmra.mrb[20].mxu1 %vm98_vm0, %v1229_v16 }
 0x1c5   :  { %3038 = vmatprep.mubr.msk.f32.mxu1 %vm98_vm0, %v4065_v62  ;;  %v1245_v39 = vpop.permute.xlu1 %1244 }
 0x1c8   :  { %3039 = vmatmul.mubr.msk.f32.gmra.mrb[22].mxu1 %vm98_vm0, %v1233_v19 }
 0x1c9   :  { %3041 = vmatprep.mubr.msk.f32.mxu1 %vm98_vm0, %v1235_v23 }
 0x1cc   :  { %3042 = vmatmul.mubr.msk.f32.gmra.mrb[24].mxu1 %vm98_vm0, %v1237_v25 }
 0x1cd   :  { %3044 = vmatprep.mubr.msk.f32.mxu1 %vm98_vm0, %v1239_v30 }
 0x1d0   :  { %3045 = vmatmul.mubr.msk.f32.gmra.mrb[26].mxu1 %vm98_vm0, %v1241_v32 }
 0x1d1   :  { %3047 = vmatprep.mubr.msk.f32.mxu1 %vm98_vm0, %v1243_v37 }
 0x1d4   :  { %3048 = vmatmul.mubr.msk.f32.gmra.mrb[28].mxu1 %vm98_vm0, %v1245_v39 }
 0x26f   :  { %v2911_v43 = vpop.f32.mrb[0].mxu1 }
 0x270   :  { %551 = vmax.xlane.f32.xlu1 %v2911_v43  ;;  %v470_v46 = vpop.f32.mrb[1].mxu1 }
 0x271   :  { %549 = vmax.xlane.f32.xlu0 %v470_v46 }
 0x273   :  { %v4132_v49 = vpop.f32.mrb[2].mxu1 }
 0x274   :  { %v4134_v53 = vpop.f32.mrb[3].mxu1 }
 0x275   :  { %555 = vmax.xlane.f32.xlu0 %v4132_v49 }
 0x277   :  { %v4137_v56 = vpop.f32.mrb[4].mxu1 }
 0x278   :  { %v4139_v59 = vpop.f32.mrb[5].mxu1 }
 0x279   :  { %553 = vmax.xlane.f32.xlu0 %v4134_v53  ;;  %557 = vmax.xlane.f32.xlu1 %v4139_v59 }
 0x27b   :  { %v4143_v45 = vpop.f32.mrb[6].mxu1 }
 0x27c   :  { %v4145_v55 = vpop.f32.mrb[7].mxu1 }
 0x27d   :  { %559 = vmax.xlane.f32.xlu0 %v4137_v56  ;;  %561 = vmax.xlane.f32.xlu1 %v4145_v55 }
 0x27f   :  { %v4149_v62 = vpop.f32.mrb[8].mxu1 }
 0x280   :  { %v4151_v15 = vpop.f32.mrb[9].mxu1 }
 0x281   :  { %563 = vmax.xlane.f32.xlu0 %v4143_v45  ;;  %565 = vmax.xlane.f32.xlu1 %v4151_v15 }
 0x283   :  { %v4155_v17 = vpop.f32.mrb[10].mxu1 }
 0x284   :  { %v4157_v21 = vpop.f32.mrb[11].mxu1 }
 0x285   :  { %567 = vmax.xlane.f32.xlu0 %v4149_v62  ;;  %569 = vmax.xlane.f32.xlu1 %v4157_v21 }
 0x287   :  { %v4161_v22 = vpop.f32.mrb[12].mxu1 }
 0x288   :  { %v4163_v24 = vpop.f32.mrb[13].mxu1 }
 0x289   :  { %571 = vmax.xlane.f32.xlu0 %v4155_v17  ;;  %573 = vmax.xlane.f32.xlu1 %v4163_v24 }
 0x28b   :  { %v4167_v27 = vpop.f32.mrb[14].mxu1 }
 0x28c   :  { %v4169_v29 = vpop.f32.mrb[15].mxu1 }
 0x28d   :  { %575 = vmax.xlane.f32.xlu0 %v4161_v22  ;;  %577 = vmax.xlane.f32.xlu1 %v4169_v29 }
 0x28f   :  { %v4178_v31 = vpop.f32.mrb[16].mxu1 }
 0x290   :  { %v4180_v33 = vpop.f32.mrb[17].mxu1 }
 0x291   :  { %579 = vmax.xlane.f32.xlu0 %v4167_v27 }
 0x293   :  { %v4182_v35 = vpop.f32.mrb[18].mxu1 }
 0x294   :  { %v4184_v38 = vpop.f32.mrb[19].mxu1 }
 0x297   :  { %v4186_v40 = vpop.f32.mrb[20].mxu1 }
 0x298   :  { %v4188_v41 = vpop.f32.mrb[21].mxu1 }
 0x29b   :  { %v4190_v47 = vpop.f32.mrb[22].mxu1 }
 0x29c   :  { %v4192_v48 = vpop.f32.mrb[23].mxu1 }
 0x29e   :  { %1246 = vrot.lane.b32.xlu1 %v3909_v4, %s3704_s0 }
 0x29f   :  { %v4194_v51 = vpop.f32.mrb[24].mxu1 }
 0x2a0   :  { %v4196_v57 = vpop.f32.mrb[25].mxu1 }
 0x2a7   :  { %3479 = vrot.lane.b32.xlu0 %v3987_v54, %s3705_s3  ;;  %v4198_v54 = vpop.f32.mrb[26].mxu1 }
 0x2a8   :  { %v4200_v63 = vpop.f32.mrb[27].mxu1 }
 0x2a9   :  { %v4202_v0 = vpop.f32.mrb[28].mxu1 }
 0x2aa   :  { %v4204_v5 = vpop.f32.mrb[29].mxu1 }
 0x2fd   :  { %v552_v9 = vpop.xlane.xlu1 %551 }
 0x2fe   :  { %v582_v11 = vsub.f32 %v2911_v43, %v552_v9  ;;  %v550_v14 = vpop.xlane.xlu0 %549 }
 0x2ff   :  { %v581_v13 = vsub.f32 %v470_v46, %v550_v14 }
 0x300   :  { %v599_v3 = vmul.f32 1.442695, %v582_v11 }
 0x301   :  { %v597_v7 = vmul.f32 1.442695, %v581_v13 }
 0x302   :  { %3568 = vpow2.f32 %v599_v3  ;;  %v556_v10 = vpop.xlane.xlu0 %555 }
 0x303   :  { %3570 = vpow2.f32 %v597_v7  ;;  %v584_v52 = vsub.f32 %v4132_v49, %v556_v10 }
 0x305   :  { %v603_v36 = vmul.f32 1.442695, %v584_v52 }
 0x306   :  { %v554_v16 = vpop.xlane.xlu0 %553  ;;  %v558_v19 = vpop.xlane.xlu1 %557 }
 0x307   :  { %v583_v50 = vsub.f32 %v4134_v53, %v554_v16  ;;  %v585_v28 = vsub.f32 %v4139_v59, %v558_v19  ;;  %3572 = vpow2.f32 %v603_v36 }
 0x309   :  { %v605_v34 = vmul.f32 1.442695, %v585_v28 }
 0x30a   :  { %v560_v23 = vpop.xlane.xlu0 %559  ;;  %v562_v25 = vpop.xlane.xlu1 %561 }
 0x30b   :  { %v587_v42 = vsub.f32 %v4145_v55, %v562_v25 }
 0x30c   :  { %v4206_v30 = vpop.eup %3568 }
 0x30d   :  { %v4208_v32 = vpop.eup %3570  ;;  %631 = vadd.xlane.f32.xlu1 %v4206_v30 }
 0x30e   :  { %v564_v37 = vpop.xlane.xlu0 %563  ;;  %v566_v39 = vpop.xlane.xlu1 %565  ;;  %629 = vadd.xlane.f32.xlu0 %v4208_v32 }
 0x30f   :  { %v588_v52 = vsub.f32 %v4143_v45, %v564_v37 }
 0x311   :  { %v611_v36 = vmul.f32 1.442695, %v588_v52  ;;  %v887_v52 = vld [vmem:[%s5067_s4 + $0x8] sm:$0xff] }
 0x312   :  { %v568_v43 = vpop.xlane.xlu0 %567  ;;  %v570_v46 = vpop.xlane.xlu1 %569 }
 0x316   :  { %v572_v9 = vpop.xlane.xlu0 %571  ;;  %v574_v11 = vpop.xlane.xlu1 %573 }
 0x317   :  { %v593_v49 = vsub.f32 %v4163_v24, %v574_v11  ;;  %v592_v59 = vsub.f32 %v4155_v17, %v572_v9  ;;  %v4282_v9 = vadd.f32 %v3925_v8, %v4180_v33  ;;  %v4286_v11 = vadd.f32 %v4186_v40, %v3925_v8 }
 0x318   :  { %v4302_v33 = vadd.f32 %v3925_v8, %v4192_v48  ;;  %v4324_v48 = vadd.f32 %v4182_v35, %v3925_v8 }
 0x319   :  { %v621_v53 = vmul.f32 1.442695, %v593_v49 }
 0x31a   :  { %v576_v14 = vpop.xlane.xlu0 %575  ;;  %v578_v13 = vpop.xlane.xlu1 %577 }
 0x31e   :  { %v4212_v3 = vpop.xlane.xlu0 %579  ;;  %1248 = vrot.lane.b32.xlu1 %v3916_v6, %s3704_s0  ;;  %v1247_v7 = vpop.permute.xlu1 %1246  ;;  %v601_v6 = vmul.f32 1.442695, %v583_v50 }
 0x31f   :  { %3050 = vmatprep.mubr.msk.f32.mxu1 %vm98_vm0, %v1247_v7  ;;  %v609_v7 = vmul.f32 1.442695, %v587_v42  ;;  %v590_v42 = vsub.f32 %v4149_v62, %v568_v43  ;;  %v596_v10 = vsub.f32 %v4167_v27, %v4212_v3  ;;  %v4316_v3 = vadd.f32 %v3925_v8, %v4200_v63 }
 0x320   :  { %3574 = vpow2.f32 %v601_v6  ;;  %v4229_v6 = vpop.eup %3572  ;;  %v4337_v63 = vadd.f32 %v4194_v51, %v3925_v8  ;;  %v4354_v51 = vadd.f32 %v3925_v8, %v4204_v5 }
 0x321   :  { %3576 = vpow2.f32 %v609_v7  ;;  %v4328_v7 = vadd.f32 %v3925_v8, %v4184_v38  ;;  %v4350_v38 = vadd.f32 %v4202_v0, %v3925_v8 }
 0x322   :  { %v3480_v4 = vpop.permute.xlu0 %3479  ;;  %3578 = vpow2.f32 %v605_v34  ;;  %v595_v34 = vsub.f32 %v4169_v29, %v578_v13 }
 0x323   :  { %v3482_v1 = vunpack.i.h.bf16 %v3480_v4  ;;  %v3481_v60 = vunpack.i.l.bf16 %v3480_v4  ;;  %v589_v4 = vsub.f32 %v4151_v15, %v566_v39  ;;  %v619_v15 = vmul.f32 1.442695, %v592_v59 }
 0x324   :  { %3484 = vrot.lane.b32.xlu0 %v3999_v61, %s3705_s3  ;;  %v625_v62 = vmul.f32 1.442695, %v595_v34  ;;  %v3493_v35 = vpack.i.bf16 %v4324_v48, %v4328_v7  ;;  %v888_v34 = vld [vmem:[%s5067_s4 + $0x10] sm:$0xff] }
 0x325   :  { %v3277_v58 = vpack.c.bf16 %v3482_v1, %v3481_v60  ;;  %v586_v60 = vsub.f32 %v4137_v56, %v560_v23  ;;  %v591_v1 = vsub.f32 %v4157_v21, %v570_v46  ;;  %v615_v56 = vmul.f32 1.442695, %v590_v42 }
 0x326   :  { %v594_v21 = vsub.f32 %v4161_v22, %v576_v14  ;;  %v627_v22 = vmul.f32 1.442695, %v596_v10  ;;  %v4278_v46 = vadd.f32 %v4178_v31, %v3925_v8  ;;  %v4290_v14 = vadd.f32 %v3925_v8, %v4188_v41 }
 0x327   :  { %3278 = vmatprep.subr.bf16.mxu0 %v3277_v58  ;;  %v607_v61 = vmul.f32 1.442695, %v586_v60  ;;  %v617_v50 = vmul.f32 1.442695, %v591_v1  ;;  %v4298_v31 = vadd.f32 %v4190_v47, %v3925_v8  ;;  %v4312_v41 = vadd.f32 %v4198_v54, %v3925_v8 }
 0x328   :  { %3280 = vmatpush3.bf16.msra.mxu0 %v3277_v58  ;;  %v613_v58 = vmul.f32 1.442695, %v589_v4  ;;  %v623_v17 = vmul.f32 1.442695, %v594_v21  ;;  %v4294_v13 = vpack.i.bf16 %v4278_v46, %v4282_v9  ;;  %v4308_v40 = vpack.i.bf16 %v4286_v11, %v4290_v14 }
 0x329   :  { %v3503_v47 = vpack.i.bf16 %v4298_v31, %v4302_v33  ;;  %v4333_v54 = vpack.i.bf16 %v4312_v41, %v4316_v3  ;;  %v4341_v4 = vadd.f32 %v3925_v8, %v4196_v57  ;;  %v4364_v60 = vpack.i.bf16 %v4350_v38, %v4354_v51 }
 0x32a   :  { %3580 = vpow2.f32 %v613_v58  ;;  %v4231_v28 = vpop.eup %3574 }
 0x32b   :  { %3582 = vpow2.f32 %v607_v61  ;;  %v4237_v45 = vpop.eup %3576  ;;  %v4358_v57 = vpack.i.bf16 %v4337_v63, %v4341_v4  ;;  %v886_v61 = vld [vmem:[%s5067_s4] sm:$0xff] }
 0x32c   :  { %3584 = vpow2.f32 %v617_v50  ;;  %v4239_v55 = vpop.eup %3578  ;;  %v4377_v42 = vpack.c.bf16 %v887_v52, %v886_v61 }
 0x32d   :  { %3586 = vpow2.f32 %v611_v36 }
 0x32e   :  { %3588 = vpow2.f32 %v621_v53 }
 0x32f   :  { %3590 = vpow2.f32 %v615_v56  ;;  %v889_v56 = vld [vmem:[%s5067_s4 + $0x18] sm:$0xff] }
 0x330   :  { %3592 = vpow2.f32 %v625_v62  ;;  %v4388_v21 = vpack.c.bf16 %v889_v56, %v888_v34 }
 0x331   :  { %3594 = vpow2.f32 %v619_v15 }
 0x332   :  { %3596 = vpow2.f32 %v623_v17 }
 0x333   :  { %3598 = vpow2.f32 %v627_v22 }
 0x334   :  { %v4244_v24 = vpop.eup %3580 }
 0x335   :  { %v4246_v29 = vpop.eup %3582 }
 0x336   :  { %v4252_v16 = vpop.eup %3584 }
 0x337   :  { %v4254_v19 = vpop.eup %3586 }
 0x338   :  { %v4258_v23 = vpop.eup %3588 }
 0x339   :  { %v4260_v25 = vpop.eup %3590 }
 0x33a   :  { %v4264_v27 = vpop.eup %3592 }
 0x33b   :  { %v4266_v37 = vpop.eup %3594 }
 0x33c   :  { %v4270_v39 = vpop.eup %3596 }
 0x33d   :  { %v4273_v43 = vpop.eup %3598 }
 0x342   :  { %635 = vadd.xlane.f32.xlu1 %v4229_v6 }
 0x343   :  { %633 = vadd.xlane.f32.xlu0 %v4231_v28 }
 0x346   :  { %641 = vadd.xlane.f32.xlu1 %v4237_v45 }
 0x347   :  { %637 = vadd.xlane.f32.xlu0 %v4239_v55 }
 0x34a   :  { %645 = vadd.xlane.f32.xlu1 %v4244_v24 }
 0x34b   :  { %639 = vadd.xlane.f32.xlu0 %v4246_v29 }
 0x34e   :  { %649 = vadd.xlane.f32.xlu1 %v4252_v16 }
 0x34f   :  { %643 = vadd.xlane.f32.xlu0 %v4254_v19 }
 0x352   :  { %653 = vadd.xlane.f32.xlu1 %v4258_v23 }
 0x353   :  { %647 = vadd.xlane.f32.xlu0 %v4260_v25 }
 0x356   :  { %657 = vadd.xlane.f32.xlu1 %v4264_v27 }
 0x357   :  { %651 = vadd.xlane.f32.xlu0 %v4266_v37 }
 0x35b   :  { %655 = vadd.xlane.f32.xlu0 %v4270_v39 }
 0x35f   :  { %659 = vadd.xlane.f32.xlu0 %v4273_v43 }
 0x367   :  { %3489 = vrot.lane.b32.xlu1 %v4294_v13, %s3704_s0 }
 0x36b   :  { %3499 = vrot.lane.b32.xlu1 %v4308_v40, %s3704_s0 }
 0x36f   :  { %3504 = vrot.lane.b32.xlu1 %v3503_v47, %s3704_s0 }
 0x373   :  { %3514 = vrot.lane.b32.xlu1 %v4333_v54, %s3704_s0 }
 0x375   :  { %3494 = vrot.lane.b32.xlu0 %v3493_v35, %s3704_s0 }
 0x379   :  { %3509 = vrot.lane.b32.xlu0 %v4358_v57, %s3704_s0 }
 0x37d   :  { %3519 = vrot.lane.b32.xlu0 %v4364_v60, %s3704_s0 }
 0x381   :  { %3534 = vrot.lane.b32.xlu0 %v3493_v35, %s3705_s3 }
 0x385   :  { %3544 = vrot.lane.b32.xlu0 %v3503_v47, %s3705_s3 }
 0x39a   :  { %v632_v0 = vpop.xlane.xlu1 %631 }
 0x39b   :  { %3600 = vrcp.f32 %v632_v0  ;;  %v630_v5 = vpop.xlane.xlu0 %629 }
 0x39c   :  { %3602 = vrcp.f32 %v630_v5 }
 0x39e   :  { %v1249_v58 = vpop.permute.xlu1 %1248 }
 0x39f   :  { %v3485_v1 = vpop.permute.xlu0 %3484  ;;  %3051 = vmatmul.mubr.msk.f32.gmra.mrb[30].mxu1 %vm98_vm0, %v1249_v58 }
 0x3a0   :  { %v3487_v50 = vunpack.i.h.bf16 %v3485_v1  ;;  %v3486_v49 = vunpack.i.l.bf16 %v3485_v1 }
 0x3a2   :  { %v3281_v36 = vpack.c.bf16 %v3487_v50, %v3486_v49 }
 0x3a4   :  { %3282 = vmatprep.subr.bf16.mxu0 %v3281_v36 }
 0x3a5   :  { %v3601_v53 = vpop.eup %3600  ;;  %3284 = vmatpush3.bf16.msra.mxu0 %v3281_v36 }
 0x3a6   :  { %v3603_v59 = vpop.eup %3602  ;;  %3286 = vmatprep.subr.bf16.mxu0 %v4377_v42  ;;  %v678_v15 = vmul.f32 %v3601_v53, %v4206_v30 }
 0x3a7   :  { %v677_v62 = vmul.f32 %v3603_v59, %v4208_v32 }
 0x3a9   :  { %2965 = vmatprep.mubr.f32.mxu0 %v677_v62 }
 0x3aa   :  { %2966 = vmatmul.mubr.f32.vlgmr.msra.gmra.mrb[16].mxu0 %v678_v15 }
 0x3ab   :  { %3288 = vmatpush3.bf16.msra.mxu0 %v4377_v42 }
 0x3ac   :  { %3290 = vmatprep.subr.bf16.mxu0 %v4388_v21 }
 0x3af   :  { %3292 = vmatpush3.bf16.msra.mxu0 %v4388_v21 }
 0x3cf   :  { %v636_v17 = vpop.xlane.xlu1 %635 }
 0x3d0   :  { %3604 = vrcp.f32 %v636_v17  ;;  %v634_v10 = vpop.xlane.xlu0 %633 }
 0x3d1   :  { %3606 = vrcp.f32 %v634_v10 }
 0x3d3   :  { %v642_v22 = vpop.xlane.xlu1 %641 }
 0x3d4   :  { %v638_v47 = vpop.xlane.xlu0 %637 }
 0x3d5   :  { %3608 = vrcp.f32 %v638_v47 }
 0x3d6   :  { %3610 = vrcp.f32 %v642_v22 }
 0x3d7   :  { %v646_v32 = vpop.xlane.xlu1 %645 }
 0x3d8   :  { %v640_v30 = vpop.xlane.xlu0 %639 }
 0x3d9   :  { %3612 = vrcp.f32 %v640_v30 }
 0x3da   :  { %v3605_v35 = vpop.eup %3604  ;;  %3614 = vrcp.f32 %v646_v32 }
 0x3db   :  { %v3607_v0 = vpop.eup %3606  ;;  %v650_v5 = vpop.xlane.xlu1 %649  ;;  %v680_v61 = vmul.f32 %v3605_v35, %v4229_v6 }
 0x3dc   :  { %v644_v58 = vpop.xlane.xlu0 %643  ;;  %v679_v1 = vmul.f32 %v3607_v0, %v4231_v28 }
 0x3dd   :  { %3616 = vrcp.f32 %v644_v58 }
 0x3de   :  { %2968 = vmatprep.mubr.f32.mxu0 %v679_v1  ;;  %3618 = vrcp.f32 %v650_v5 }
 0x3df   :  { %v3609_v52 = vpop.eup %3608  ;;  %2969 = vmatmul.mubr.f32.gmra.mrb[18].mxu0 %v680_v61  ;;  %v654_v50 = vpop.xlane.xlu1 %653 }
 0x3e0   :  { %v648_v49 = vpop.xlane.xlu0 %647  ;;  %v681_v36 = vmul.f32 %v3609_v52, %v4239_v55  ;;  %v3611_v53 = vpop.eup %3610 }
 0x3e1   :  { %3620 = vrcp.f32 %v648_v49  ;;  %v683_v6 = vmul.f32 %v3611_v53, %v4237_v45 }
 0x3e2   :  { %2971 = vmatprep.mubr.f32.mxu0 %v681_v36  ;;  %3622 = vrcp.f32 %v654_v50 }
 0x3e3   :  { %v3613_v34 = vpop.eup %3612  ;;  %v658_v56 = vpop.xlane.xlu1 %657 }
 0x3e4   :  { %v652_v59 = vpop.xlane.xlu0 %651  ;;  %v682_v28 = vmul.f32 %v3613_v34, %v4246_v29  ;;  %v3615_v62 = vpop.eup %3614 }
 0x3e5   :  { %3624 = vrcp.f32 %v652_v59  ;;  %v685_v32 = vmul.f32 %v3615_v62, %v4244_v24 }
 0x3e6   :  { %2972 = vmatmul.mubr.f32.gmra.mrb[20].mxu0 %v682_v28  ;;  %3626 = vrcp.f32 %v658_v56 }
 0x3e7   :  { %v3617_v15 = vpop.eup %3616  ;;  %2974 = vmatprep.mubr.f32.mxu0 %v683_v6  ;;  %v3490_v17 = vpop.permute.xlu1 %3489 }
 0x3e8   :  { %v656_v10 = vpop.xlane.xlu0 %655  ;;  %v3492_v55 = vunpack.i.h.bf16 %v3490_v17  ;;  %v3491_v22 = vunpack.i.l.bf16 %v3490_v17  ;;  %v684_v47 = vmul.f32 %v3617_v15, %v4254_v19  ;;  %v3619_v30 = vpop.eup %3618 }
 0x3e9   :  { %3628 = vrcp.f32 %v656_v10  ;;  %v687_v5 = vmul.f32 %v3619_v30, %v4252_v16 }
 0x3ea   :  { %v3301_v35 = vpack.c.bf16 %v3492_v55, %v3491_v22  ;;  %2975 = vmatmul.mubr.f32.gmra.mrb[22].mxu0 %v684_v47 }
 0x3eb   :  { %v3621_v29 = vpop.eup %3620  ;;  %2977 = vmatprep.mubr.f32.mxu0 %v685_v32 }
 0x3ec   :  { %v660_v45 = vpop.xlane.xlu0 %659  ;;  %v686_v0 = vmul.f32 %v3621_v29, %v4260_v25  ;;  %3303 = vmatprep.subr.msk.bf16.mxu0 %vm4039_vm1, %v3301_v35  ;;  %v3623_v58 = vpop.eup %3622 }
 0x3ed   :  { %3630 = vrcp.f32 %v660_v45  ;;  %v689_v1 = vmul.f32 %v3623_v58, %v4258_v23 }
 0x3ee   :  { %2978 = vmatmul.mubr.f32.gmra.mrb[24].mxu0 %v686_v0 }
 0x3ef   :  { %v3625_v19 = vpop.eup %3624  ;;  %2980 = vmatprep.mubr.f32.mxu0 %v687_v5 }
 0x3f0   :  { %v688_v24 = vmul.f32 %v3625_v19, %v4266_v37  ;;  %v3627_v61 = vpop.eup %3626 }
 0x3f1   :  { %v691_v50 = vmul.f32 %v3627_v61, %v4264_v27  ;;  %v3495_v27 = vpop.permute.xlu0 %3494 }
 0x3f2   :  { %2981 = vmatmul.mubr.f32.gmra.mrb[26].mxu0 %v688_v24  ;;  %v3496_v56 = vunpack.i.l.bf16 %v3495_v27 }
 0x3f3   :  { %v3629_v52 = vpop.eup %3628  ;;  %2983 = vmatprep.mubr.f32.mxu0 %v689_v1 }
 0x3f4   :  { %v690_v25 = vmul.f32 %v3629_v52, %v4270_v39  ;;  %v3497_v39 = vunpack.i.h.bf16 %v3495_v27 }
 0x3f5   :  { %v3510_v55 = vpop.permute.xlu0 %3509 }
 0x3f6   :  { %2984 = vmatmul.mubr.f32.gmra.mrb[28].mxu0 %v690_v25  ;;  %v3307_v28 = vpack.c.bf16 %v3497_v39, %v3496_v56  ;;  %v3512_v22 = vunpack.i.h.bf16 %v3510_v55 }
 0x3f7   :  { %v3631_v49 = vpop.eup %3630  ;;  %2986 = vmatprep.mubr.f32.mxu0 %v691_v50 }
 0x3f8   :  { %v692_v16 = vmul.f32 %v3631_v49, %v4273_v43 }
 0x3f9   :  { %v3520_v45 = vpop.permute.xlu0 %3519 }
 0x3fa   :  { %2987 = vmatmul.mubr.f32.gmra.mrb[30].mxu0 %v692_v16  ;;  %v3522_v0 = vunpack.i.h.bf16 %v3520_v45  ;;  %v3521_v5 = vunpack.i.l.bf16 %v3520_v45 }
 0x3fc   :  { %v3337_v58 = vpack.c.bf16 %v3522_v0, %v3521_v5 }
 0x472   :  { %v3052_v36 = vpop.f32.mrb[30].mxu1 }
 0x473   :  { %v4410_v53 = vadd.f32 %v3052_v36, %v3925_v8  ;;  %v1418_v37 = vpop.f32.mrb[31].mxu1 }
 0x474   :  { %v4413_v23 = vadd.f32 %v3925_v8, %v1418_v37  ;;  %v3500_v8 = vpop.permute.xlu1 %3499 }
 0x475   :  { %v3502_v6 = vunpack.i.h.bf16 %v3500_v8  ;;  %v3501_v62 = vunpack.i.l.bf16 %v3500_v8 }
 0x476   :  { %v4417_v34 = vpack.i.bf16 %v4410_v53, %v4413_v23 }
 0x478   :  { %3524 = vrot.lane.b32.xlu1 %v4417_v34, %s3704_s0  ;;  %v3505_v15 = vpop.permute.xlu1 %3504 }
 0x479   :  { %v3506_v17 = vunpack.i.l.bf16 %v3505_v15 }
 0x47c   :  { %3529 = vrot.lane.b32.xlu1 %v4294_v13, %s3705_s3  ;;  %v3313_v13 = vpack.c.bf16 %v3502_v6, %v3501_v62  ;;  %v3515_v32 = vpop.permute.xlu1 %3514  ;;  %v3535_v6 = vpop.permute.xlu0 %3534 }
 0x47d   :  { %v2967_v43 = vpop.f32.mrb[16].mxu0  ;;  %v3517_v30 = vunpack.i.h.bf16 %v3515_v32 }
 0x47e   :  { %v807_v59 = vpop.f32.mrb[17].mxu0 }
 0x47f   :  { %2997 = vmatprep.mubr.msk.f32.mxu0 %vm98_vm0, %v807_v59 }
 0x480   :  { %2998 = vmatmul.mubr.msk.f32.vlgmr.msra.gmra.mrb[32].mxu0 %vm98_vm0, %v2967_v43  ;;  %3539 = vrot.lane.b32.xlu1 %v4308_v40, %s3705_s3  ;;  %v3507_v40 = vunpack.i.h.bf16 %v3505_v15  ;;  %v3536_v15 = vunpack.i.l.bf16 %v3535_v6 }
 0x481   :  { %3306 = vmatpush3.bf16.xpose.msk.msra.mxu0 %vm4039_vm1, %v3301_v35  ;;  %v3516_v35 = vunpack.i.l.bf16 %v3515_v32 }
 0x482   :  { %3309 = vmatprep.subr.msk.bf16.mxu0 %vm4039_vm1, %v3307_v28  ;;  %v3319_v10 = vpack.c.bf16 %v3507_v40, %v3506_v17 }
 0x483   :  { %v3331_v29 = vpack.c.bf16 %v3517_v30, %v3516_v35 }
 0x484   :  { %3549 = vrot.lane.b32.xlu1 %v4358_v57, %s3705_s3  ;;  %v3511_v57 = vunpack.i.l.bf16 %v3510_v55 }
 0x486   :  { %v3325_v47 = vpack.c.bf16 %v3512_v22, %v3511_v57 }
 0x489   :  { %3312 = vmatpush3.bf16.xpose.msk.msra.mxu0 %vm4039_vm1, %v3307_v28 }
 0x48a   :  { %3315 = vmatprep.subr.msk.bf16.mxu0 %vm4039_vm1, %v3313_v13 }
 0x491   :  { %3318 = vmatpush3.bf16.xpose.msk.msra.mxu0 %vm4039_vm1, %v3313_v13  ;;  %v3537_v13 = vunpack.i.h.bf16 %v3535_v6 }
 0x492   :  { %3321 = vmatprep.subr.msk.bf16.mxu0 %vm4039_vm1, %v3319_v10 }
 0x493   :  { %v3353_v22 = vpack.c.bf16 %v3537_v13, %v3536_v15 }
 0x499   :  { %3324 = vmatpush3.bf16.xpose.msk.msra.mxu0 %vm4039_vm1, %v3319_v10 }
 0x49a   :  { %3327 = vmatprep.subr.msk.bf16.mxu0 %vm4039_vm1, %v3325_v47 }
 0x4a1   :  { %3330 = vmatpush3.bf16.xpose.msk.msra.mxu0 %vm4039_vm1, %v3325_v47  ;;  %v3545_v47 = vpop.permute.xlu0 %3544 }
 0x4a2   :  { %3333 = vmatprep.subr.msk.bf16.mxu0 %vm4039_vm1, %v3331_v29  ;;  %v3547_v32 = vunpack.i.h.bf16 %v3545_v47  ;;  %v3546_v30 = vunpack.i.l.bf16 %v3545_v47 }
 0x4a9   :  { %3336 = vmatpush3.bf16.xpose.msk.msra.mxu0 %vm4039_vm1, %v3331_v29  ;;  %v3361_v29 = vpack.c.bf16 %v3547_v32, %v3546_v30 }
 0x4aa   :  { %3339 = vmatprep.subr.msk.bf16.mxu0 %vm4039_vm1, %v3337_v58 }
 0x4b1   :  { %3342 = vmatpush3.bf16.xpose.msk.msra.mxu0 %vm4039_vm1, %v3337_v58 }
 0x4b2   :  { %v2970_v19 = vpop.f32.mrb[18].mxu0 }
 0x4b3   :  { %v817_v24 = vpop.f32.mrb[19].mxu0 }
 0x4b4   :  { %3000 = vmatprep.mubr.msk.f32.mxu0 %vm98_vm0, %v817_v24 }
 0x4b5   :  { %3001 = vmatmul.mubr.msk.f32.gmra.mrb[34].mxu0 %vm98_vm0, %v2970_v19 }
 0x4b9   :  { %v2973_v1 = vpop.f32.mrb[20].mxu0 }
 0x4ba   :  { %v827_v61 = vpop.f32.mrb[21].mxu0 }
 0x4bb   :  { %3003 = vmatprep.mubr.msk.f32.mxu0 %vm98_vm0, %v827_v61 }
 0x4bc   :  { %3004 = vmatmul.mubr.msk.f32.gmra.mrb[36].mxu0 %vm98_vm0, %v2973_v1 }
 0x4bd   :  { %v2976_v52 = vpop.f32.mrb[22].mxu0 }
 0x4be   :  { %v837_v25 = vpop.f32.mrb[23].mxu0 }
 0x4bf   :  { %3006 = vmatprep.mubr.msk.f32.mxu0 %vm98_vm0, %v837_v25 }
 0x4c0   :  { %3007 = vmatmul.mubr.msk.f32.gmra.mrb[38].mxu0 %vm98_vm0, %v2976_v52 }
 0x4c1   :  { %v2979_v50 = vpop.f32.mrb[24].mxu0 }
 0x4c2   :  { %v847_v49 = vpop.f32.mrb[25].mxu0 }
 0x4c3   :  { %3009 = vmatprep.mubr.msk.f32.mxu0 %vm98_vm0, %v847_v49 }
 0x4c4   :  { %3010 = vmatmul.mubr.msk.f32.gmra.mrb[40].mxu0 %vm98_vm0, %v2979_v50 }
 0x4c5   :  { %v2982_v16 = vpop.f32.mrb[26].mxu0 }
 0x4c6   :  { %v857_v36 = vpop.f32.mrb[27].mxu0 }
 0x4c7   :  { %3012 = vmatprep.mubr.msk.f32.mxu0 %vm98_vm0, %v857_v36 }
 0x4c8   :  { %3013 = vmatmul.mubr.msk.f32.gmra.mrb[42].mxu0 %vm98_vm0, %v2982_v16 }
 0x4c9   :  { %v2985_v37 = vpop.f32.mrb[28].mxu0 }
 0x4ca   :  { %v867_v27 = vpop.f32.mrb[29].mxu0 }
 0x4cb   :  { %3015 = vmatprep.mubr.msk.f32.mxu0 %vm98_vm0, %v867_v27 }
 0x4cc   :  { %3016 = vmatmul.mubr.msk.f32.gmra.mrb[44].mxu0 %vm98_vm0, %v2985_v37 }
 0x4cd   :  { %v2988_v39 = vpop.f32.mrb[30].mxu0 }
 0x4ce   :  { %v877_v56 = vpop.f32.mrb[31].mxu0 }
 0x4cf   :  { %3018 = vmatprep.mubr.msk.f32.mxu0 %vm98_vm0, %v877_v56 }
 0x4d0   :  { %3019 = vmatmul.mubr.msk.f32.gmra.mrb[46].mxu0 %vm98_vm0, %v2988_v39 }
 0x4d1   :  { %3085 = vmatprep.mubr.msk.f32.mxu0 %vm98_vm0, %v4282_v9 }
 0x4ea   :  { %v3525_v43 = vpop.permute.xlu1 %3524 }
 0x4eb   :  { %v3527_v59 = vunpack.i.h.bf16 %v3525_v43  ;;  %v3526_v28 = vunpack.i.l.bf16 %v3525_v43 }
 0x4ed   :  { %v3343_v8 = vpack.c.bf16 %v3527_v59, %v3526_v28 }
 0x4ee   :  { %v3530_v62 = vpop.permute.xlu1 %3529 }
 0x4ef   :  { %v3532_v40 = vunpack.i.h.bf16 %v3530_v62  ;;  %v3531_v17 = vunpack.i.l.bf16 %v3530_v62  ;;  %3345 = vmatprep.subr.msk.bf16.mxu0 %vm4039_vm1, %v3343_v8 }
 0x4f0   :  { %3348 = vmatpush3.bf16.xpose.msk.msra.mxu0 %vm4039_vm1, %v3343_v8 }
 0x4f1   :  { %v3349_v10 = vpack.c.bf16 %v3532_v40, %v3531_v17 }
 0x4f2   :  { %v3540_v55 = vpop.permute.xlu1 %3539 }
 0x4f3   :  { %3350 = vmatprep.subr.bf16.mxu0 %v3349_v10  ;;  %3389 = vmatprep.subr.bf16.mxu1 %v3349_v10  ;;  %v3542_v9 = vunpack.i.h.bf16 %v3540_v55  ;;  %v3541_v57 = vunpack.i.l.bf16 %v3540_v55 }
 0x4f4   :  { %3397 = vmatpush3.bf16.msra.mxu1 %v3349_v10 }
 0x4f5   :  { %3390 = vmatprep.subr.bf16.mxu1 %v3353_v22  ;;  %v3357_v35 = vpack.c.bf16 %v3542_v9, %v3541_v57 }
 0x4f6   :  { %v3550_v2 = vpop.permute.xlu1 %3549 }
 0x4f7   :  { %3086 = vmatmul.mubr.msk.f32.vlgmr.msra.gmra.mrb[48].mxu0 %vm98_vm0, %v4278_v46  ;;  %v3552_v45 = vunpack.i.h.bf16 %v3550_v2  ;;  %v3551_v0 = vunpack.i.l.bf16 %v3550_v2 }
 0x4f8   :  { %3088 = vmatprep.mubr.msk.f32.mxu0 %vm98_vm0, %v4328_v7  ;;  %3352 = vmatpush3.bf16.msra.mxu0 %v3349_v10 }
 0x4f9   :  { %3398 = vmatpush3.bf16.msra.mxu1 %v3353_v22  ;;  %3354 = vmatprep.subr.bf16.mxu0 %v3353_v22  ;;  %v3365_v46 = vpack.c.bf16 %v3552_v45, %v3551_v0 }
 0x4fa   :  { %3391 = vmatprep.subr.bf16.mxu1 %v3357_v35 }
 0x4fb   :  { %3089 = vmatmul.mubr.msk.f32.gmra.mrb[50].mxu0 %vm98_vm0, %v4324_v48 }
 0x4fc   :  { %3091 = vmatprep.mubr.msk.f32.mxu0 %vm98_vm0, %v4290_v14  ;;  %3356 = vmatpush3.bf16.msra.mxu0 %v3353_v22 }
 0x4fd   :  { %3399 = vmatpush3.bf16.msra.mxu1 %v3357_v35  ;;  %3358 = vmatprep.subr.bf16.mxu0 %v3357_v35 }
 0x4fe   :  { %3392 = vmatprep.subr.bf16.mxu1 %v3361_v29 }
 0x4ff   :  { %3092 = vmatmul.mubr.msk.f32.gmra.mrb[52].mxu0 %vm98_vm0, %v4286_v11 }
 0x500   :  { %3094 = vmatprep.mubr.msk.f32.mxu0 %vm98_vm0, %v4302_v33  ;;  %3360 = vmatpush3.bf16.msra.mxu0 %v3357_v35 }
 0x501   :  { %3400 = vmatpush3.bf16.msra.mxu1 %v3361_v29  ;;  %3362 = vmatprep.subr.bf16.mxu0 %v3361_v29 }
 0x502   :  { %3393 = vmatprep.subr.bf16.mxu1 %v3365_v46 }
 0x503   :  { %3095 = vmatmul.mubr.msk.f32.gmra.mrb[54].mxu0 %vm98_vm0, %v4298_v31 }
 0x504   :  { %3097 = vmatprep.mubr.msk.f32.mxu0 %vm98_vm0, %v4341_v4  ;;  %3364 = vmatpush3.bf16.msra.mxu0 %v3361_v29 }
 0x505   :  { %3401 = vmatpush3.bf16.msra.mxu1 %v3365_v46  ;;  %3366 = vmatprep.subr.bf16.mxu0 %v3365_v46 }
 0x507   :  { %3098 = vmatmul.mubr.msk.f32.gmra.mrb[56].mxu0 %vm98_vm0, %v4337_v63 }
 0x508   :  { %3100 = vmatprep.mubr.msk.f32.mxu0 %vm98_vm0, %v4316_v3  ;;  %3368 = vmatpush3.bf16.msra.mxu0 %v3365_v46 }
 0x50b   :  { %3101 = vmatmul.mubr.msk.f32.gmra.mrb[58].mxu0 %vm98_vm0, %v4312_v41 }
 0x50c   :  { %3103 = vmatprep.mubr.msk.f32.mxu0 %vm98_vm0, %v4354_v51 }
 0x50f   :  { %3104 = vmatmul.mubr.msk.f32.gmra.mrb[60].mxu0 %vm98_vm0, %v4350_v38 }
 0x510   :  { %3106 = vmatprep.mubr.msk.f32.mxu0 %vm98_vm0, %v4413_v23 }
 0x513   :  { %3107 = vmatmul.mubr.msk.f32.gmra.mrb[62].mxu0 %vm98_vm0, %v4410_v53 }
 0x553   :  { %v4505_v11 = vpop.f32.mrb[32].mxu0 }
 0x554   :  { %v4507_v14 = vpop.f32.mrb[33].mxu0 }
 0x588   :  { %v4509_v31 = vpop.f32.mrb[34].mxu0 }
 0x589   :  { %v4511_v33 = vpop.f32.mrb[35].mxu0 }
 0x58f   :  { %v4513_v41 = vpop.f32.mrb[36].mxu0 }
 0x590   :  { %v4515_v3 = vpop.f32.mrb[37].mxu0 }
 0x593   :  { %v4517_v48 = vpop.f32.mrb[38].mxu0 }
 0x594   :  { %v4519_v7 = vpop.f32.mrb[39].mxu0 }
 0x597   :  { %v4521_v63 = vpop.f32.mrb[40].mxu0 }
 0x598   :  { %v4523_v4 = vpop.f32.mrb[41].mxu0 }
 0x59b   :  { %v4525_v38 = vpop.f32.mrb[42].mxu0 }
 0x59c   :  { %v4527_v51 = vpop.f32.mrb[43].mxu0 }
 0x59f   :  { %v4529_v53 = vpop.f32.mrb[44].mxu0 }
 0x5a0   :  { %v4531_v23 = vpop.f32.mrb[45].mxu0 }
 0x5a3   :  { %v4533_v5 = vpop.f32.mrb[46].mxu0 }
 0x5a4   :  { %v4535_v58 = vpop.f32.mrb[47].mxu0 }
 0x5ca   :  { %v3087_v19 = vpop.f32.mrb[48].mxu0 }
 0x5cb   :  { %1686 = vmax.xlane.f32.xlu1 %v3087_v19  ;;  %v1605_v24 = vpop.f32.mrb[49].mxu0 }
 0x5cc   :  { %1684 = vmax.xlane.f32.xlu0 %v1605_v24 }
 0x5ce   :  { %v3090_v1 = vpop.f32.mrb[50].mxu0 }
 0x5cf   :  { %v1615_v61 = vpop.f32.mrb[51].mxu0 }
 0x5d0   :  { %1690 = vmax.xlane.f32.xlu0 %v3090_v1 }
 0x5d2   :  { %v3093_v52 = vpop.f32.mrb[52].mxu0 }
 0x5d3   :  { %v1625_v25 = vpop.f32.mrb[53].mxu0 }
 0x5d4   :  { %1688 = vmax.xlane.f32.xlu0 %v1615_v61  ;;  %1692 = vmax.xlane.f32.xlu1 %v1625_v25 }
 0x5d6   :  { %v3096_v50 = vpop.f32.mrb[54].mxu0 }
 0x5d7   :  { %v1635_v49 = vpop.f32.mrb[55].mxu0 }
 0x5d8   :  { %1694 = vmax.xlane.f32.xlu0 %v3093_v52  ;;  %1696 = vmax.xlane.f32.xlu1 %v1635_v49 }
 0x5da   :  { %v4537_v16 = vpop.f32.mrb[56].mxu0 }
 0x5db   :  { %v4539_v36 = vpop.f32.mrb[57].mxu0 }
 0x5dc   :  { %1698 = vmax.xlane.f32.xlu0 %v3096_v50  ;;  %1700 = vmax.xlane.f32.xlu1 %v4539_v36 }
 0x5de   :  { %v4542_v37 = vpop.f32.mrb[58].mxu0 }
 0x5df   :  { %v4544_v27 = vpop.f32.mrb[59].mxu0 }
 0x5e0   :  { %1702 = vmax.xlane.f32.xlu0 %v4537_v16  ;;  %1704 = vmax.xlane.f32.xlu1 %v4544_v27 }
 0x5e2   :  { %v4548_v39 = vpop.f32.mrb[60].mxu0 }
 0x5e3   :  { %v4550_v56 = vpop.f32.mrb[61].mxu0 }
 0x5e4   :  { %1706 = vmax.xlane.f32.xlu0 %v4542_v37  ;;  %1708 = vmax.xlane.f32.xlu1 %v4550_v56 }
 0x5e6   :  { %v4554_v43 = vpop.f32.mrb[62].mxu0 }
 0x5e7   :  { %v4556_v59 = vpop.f32.mrb[63].mxu0 }
 0x5e8   :  { %1710 = vmax.xlane.f32.xlu0 %v4548_v39  ;;  %1712 = vmax.xlane.f32.xlu1 %v4556_v59 }
 0x5ec   :  { %1714 = vmax.xlane.f32.xlu0 %v4554_v43 }
 0x5f9   :  { %3554 = vrot.lane.b32.xlu1 %v4333_v54, %s3705_s3 }
 0x602   :  { %3559 = vrot.lane.b32.xlu0 %v4364_v60, %s3705_s3 }
 0x658   :  { %v1687_v28 = vpop.xlane.xlu1 %1686 }
 0x659   :  { %v1717_v8 = vsub.f32 %v3087_v19, %v1687_v28  ;;  %v1685_v6 = vpop.xlane.xlu0 %1684 }
 0x65a   :  { %v1716_v62 = vsub.f32 %v1605_v24, %v1685_v6 }
 0x65b   :  { %v1734_v13 = vmul.f32 1.442695, %v1717_v8 }
 0x65c   :  { %v1732_v15 = vmul.f32 1.442695, %v1716_v62 }
 0x65d   :  { %3632 = vpow2.f32 %v1734_v13  ;;  %v1691_v40 = vpop.xlane.xlu0 %1690 }
 0x65e   :  { %3634 = vpow2.f32 %v1732_v15  ;;  %v1719_v17 = vsub.f32 %v3090_v1, %v1691_v40 }
 0x660   :  { %v1738_v10 = vmul.f32 1.442695, %v1719_v17 }
 0x661   :  { %v1689_v55 = vpop.xlane.xlu0 %1688  ;;  %v1693_v22 = vpop.xlane.xlu1 %1692 }
 0x662   :  { %3636 = vpow2.f32 %v1738_v10  ;;  %v1718_v9 = vsub.f32 %v1615_v61, %v1689_v55  ;;  %v1720_v57 = vsub.f32 %v1625_v25, %v1693_v22 }
 0x664   :  { %v1736_v54 = vmul.f32 1.442695, %v1718_v9  ;;  %v1740_v47 = vmul.f32 1.442695, %v1720_v57 }
 0x665   :  { %v1695_v32 = vpop.xlane.xlu0 %1694  ;;  %v1697_v60 = vpop.xlane.xlu1 %1696 }
 0x666   :  { %3638 = vpow2.f32 %v1736_v54  ;;  %v1721_v30 = vsub.f32 %v3093_v52, %v1695_v32  ;;  %v1722_v46 = vsub.f32 %v1635_v49, %v1697_v60 }
 0x667   :  { %v4565_v35 = vpop.eup %3632  ;;  %3640 = vpow2.f32 %v1740_v47 }
 0x668   :  { %v4567_v2 = vpop.eup %3634  ;;  %v1742_v29 = vmul.f32 1.442695, %v1721_v30  ;;  %1766 = vadd.xlane.f32.xlu0 %v4565_v35  ;;  %v1744_v25 = vmul.f32 1.442695, %v1722_v46 }
 0x669   :  { %v1699_v45 = vpop.xlane.xlu0 %1698  ;;  %v1701_v0 = vpop.xlane.xlu1 %1700  ;;  %1764 = vadd.xlane.f32.xlu1 %v4567_v2 }
 0x66a   :  { %3642 = vpow2.f32 %v1742_v29  ;;  %v1723_v19 = vsub.f32 %v3096_v50, %v1699_v45  ;;  %v1724_v28 = vsub.f32 %v4539_v36, %v1701_v0 }
 0x66c   :  { %v4571_v24 = vpop.eup %3636  ;;  %v1746_v1 = vmul.f32 1.442695, %v1723_v19  ;;  %v1748_v50 = vmul.f32 1.442695, %v1724_v28 }
 0x66d   :  { %v4573_v61 = vpop.xlane.xlu0 %1702  ;;  %v1705_v52 = vpop.xlane.xlu1 %1704  ;;  %1770 = vadd.xlane.f32.xlu0 %v4571_v24 }
 0x66e   :  { %3644 = vpow2.f32 %v1746_v1  ;;  %v1726_v49 = vsub.f32 %v4544_v27, %v1705_v52 }
 0x66f   :  { %3646 = vpow2.f32 %v1744_v25 }
 0x670   :  { %v4577_v8 = vpop.eup %3638  ;;  %3648 = vpow2.f32 %v1748_v50  ;;  %v1752_v10 = vmul.f32 1.442695, %v1726_v49 }
 0x671   :  { %v4579_v6 = vpop.eup %3640  ;;  %v1707_v62 = vpop.xlane.xlu0 %1706  ;;  %1768 = vadd.xlane.f32.xlu0 %v4577_v8 }
 0x672   :  { %v1709_v13 = vpop.xlane.xlu1 %1708  ;;  %1772 = vadd.xlane.f32.xlu1 %v4579_v6  ;;  %3650 = vpow2.f32 %v1752_v10 }
 0x673   :  { %v1728_v40 = vsub.f32 %v4550_v56, %v1709_v13  ;;  %v1727_v13 = vsub.f32 %v4542_v37, %v1707_v62 }
 0x674   :  { %v4584_v15 = vpop.eup %3642 }
 0x675   :  { %v1711_v17 = vpop.xlane.xlu0 %1710  ;;  %1774 = vadd.xlane.f32.xlu0 %v4584_v15  ;;  %v1756_v22 = vmul.f32 1.442695, %v1728_v40  ;;  %v1754_v50 = vmul.f32 1.442695, %v1727_v13 }
 0x676   :  { %v1713_v36 = vpop.xlane.xlu1 %1712  ;;  %v1729_v49 = vsub.f32 %v4548_v39, %v1711_v17 }
 0x677   :  { %v1730_v27 = vsub.f32 %v4556_v59, %v1713_v36  ;;  %3652 = vpow2.f32 %v1756_v22 }
 0x678   :  { %v4588_v55 = vpop.eup %3644  ;;  %v1758_v40 = vmul.f32 1.442695, %v1729_v49 }
 0x679   :  { %1778 = vadd.xlane.f32.xlu0 %v4588_v55  ;;  %v1715_v9 = vpop.xlane.xlu0 %1714  ;;  %v4592_v32 = vpop.eup %3646  ;;  %v1760_v30 = vmul.f32 1.442695, %v1730_v27 }
 0x67a   :  { %v3555_v57 = vpop.permute.xlu1 %3554  ;;  %v1731_v29 = vsub.f32 %v4554_v43, %v1715_v9  ;;  %v4596_v46 = vpop.eup %3648 }
 0x67b   :  { %v3557_v54 = vunpack.i.h.bf16 %v3555_v57  ;;  %v3556_v47 = vunpack.i.l.bf16 %v3555_v57  ;;  %3654 = vpow2.f32 %v1760_v30 }
 0x67c   :  { %v1762_v19 = vmul.f32 1.442695, %v1731_v29  ;;  %v4601_v43 = vpop.eup %3650 }
 0x67d   :  { %v3369_v56 = vpack.c.bf16 %v3557_v54, %v3556_v47  ;;  %1776 = vadd.xlane.f32.xlu0 %v4592_v32  ;;  %v3560_v60 = vpop.permute.xlu0 %3559 }
 0x67e   :  { %v3562_v45 = vunpack.i.h.bf16 %v3560_v60  ;;  %v3561_v0 = vunpack.i.l.bf16 %v3560_v60  ;;  %3656 = vpow2.f32 %v1762_v19 }
 0x67f   :  { %3370 = vmatprep.subr.bf16.mxu0 %v3369_v56  ;;  %3394 = vmatprep.subr.bf16.mxu1 %v3369_v56 }
 0x680   :  { %3372 = vmatpush3.bf16.msra.mxu0 %v3369_v56  ;;  %3402 = vmatpush3.bf16.msra.mxu1 %v3369_v56  ;;  %v3373_v59 = vpack.c.bf16 %v3562_v45, %v3561_v0 }
 0x681   :  { %1780 = vadd.xlane.f32.xlu0 %v4596_v46  ;;  %v4604_v1 = vpop.eup %3652 }
 0x682   :  { %3374 = vmatprep.subr.bf16.mxu0 %v3373_v59  ;;  %3395 = vmatprep.subr.bf16.mxu1 %v3373_v59 }
 0x683   :  { %3564 = vrot.lane.b32.xlu1 %v4417_v34, %s3705_s3  ;;  %v1725_v34 = vsub.f32 %v4537_v16, %v4573_v61 }
 0x684   :  { %3376 = vmatpush3.bf16.msra.mxu0 %v3373_v59  ;;  %3403 = vmatpush3.bf16.msra.mxu1 %v3373_v59 }
 0x685   :  { %1784 = vadd.xlane.f32.xlu0 %v4601_v43  ;;  %v4607_v52 = vpop.eup %3654  ;;  %v1750_v28 = vmul.f32 1.442695, %v1725_v34 }
 0x687   :  { %3658 = vpow2.f32 %v1750_v28 }
 0x688   :  { %v4610_v25 = vpop.eup %3656  ;;  %3660 = vpow2.f32 %v1754_v50 }
 0x689   :  { %1788 = vadd.xlane.f32.xlu0 %v4604_v1  ;;  %3662 = vpow2.f32 %v1758_v40 }
 0x68d   :  { %1792 = vadd.xlane.f32.xlu0 %v4607_v52 }
 0x691   :  { %1794 = vadd.xlane.f32.xlu0 %v4610_v25  ;;  %v4617_v36 = vpop.eup %3658 }
 0x692   :  { %v4620_v10 = vpop.eup %3660 }
 0x693   :  { %v4623_v22 = vpop.eup %3662 }
 0x6a7   :  { %1782 = vadd.xlane.f32.xlu1 %v4617_v36 }
 0x6ab   :  { %1786 = vadd.xlane.f32.xlu1 %v4620_v10 }
 0x6af   :  { %1790 = vadd.xlane.f32.xlu1 %v4623_v22 }
 0x6f5   :  { %v1767_v16 = vpop.xlane.xlu0 %1766 }
 0x6f6   :  { %v1765_v37 = vpop.xlane.xlu1 %1764 }
 0x6f7   :  { %3664 = vrcp.f32 %v1765_v37 }
 0x6f8   :  { %3666 = vrcp.f32 %v1767_v16 }
 0x6fa   :  { %v1771_v61 = vpop.xlane.xlu0 %1770 }
 0x6fe   :  { %v1769_v39 = vpop.xlane.xlu0 %1768 }
 0x6ff   :  { %3668 = vrcp.f32 %v1769_v39  ;;  %v1773_v62 = vpop.xlane.xlu1 %1772 }
 0x700   :  { %3670 = vrcp.f32 %v1771_v61 }
 0x701   :  { %v3665_v17 = vpop.eup %3664  ;;  %3672 = vrcp.f32 %v1773_v62 }
 0x702   :  { %v1775_v9 = vpop.xlane.xlu0 %1774  ;;  %v1812_v57 = vmul.f32 %v3665_v17, %v4567_v2  ;;  %v3667_v30 = vpop.eup %3666 }
 0x703   :  { %v3565_v27 = vpop.permute.xlu1 %3564  ;;  %3674 = vrcp.f32 %v1775_v9  ;;  %v1813_v45 = vmul.f32 %v3667_v30, %v4565_v35 }
 0x704   :  { %v3567_v54 = vunpack.i.h.bf16 %v3565_v27  ;;  %v3566_v47 = vunpack.i.l.bf16 %v3565_v27  ;;  %3141 = vmatprep.mubr.f32.mxu0 %v1812_v57 }
 0x706   :  { %v3377_v56 = vpack.c.bf16 %v3567_v54, %v3566_v47  ;;  %v1779_v60 = vpop.xlane.xlu0 %1778 }
 0x707   :  { %3676 = vrcp.f32 %v1779_v60 }
 0x708   :  { %3378 = vmatprep.subr.bf16.mxu0 %v3377_v56  ;;  %3396 = vmatprep.subr.bf16.mxu1 %v3377_v56 }
 0x709   :  { %v3669_v29 = vpop.eup %3668  ;;  %3380 = vmatpush3.bf16.msra.mxu0 %v3377_v56  ;;  %3404 = vmatpush3.bf16.msra.mxu1 %v3377_v56 }
 0x70a   :  { %v1777_v0 = vpop.xlane.xlu0 %1776  ;;  %v1814_v59 = vmul.f32 %v3669_v29, %v4577_v8  ;;  %3382 = vmatprep.subr.bf16.mxu1 %v4377_v42  ;;  %v3671_v2 = vpop.eup %3670 }
 0x70b   :  { %3678 = vrcp.f32 %v1777_v0  ;;  %v3673_v19 = vpop.eup %3672  ;;  %v1815_v28 = vmul.f32 %v3671_v2, %v4571_v24 }
 0x70c   :  { %3142 = vmatmul.mubr.f32.vlgmr.msra.gmra.mrb[64].mxu0 %v1813_v45  ;;  %v1816_v50 = vmul.f32 %v3673_v19, %v4579_v6 }
 0x70d   :  { %3144 = vmatprep.mubr.f32.mxu0 %v1814_v59  ;;  %v3675_v13 = vpop.eup %3674 }
 0x70e   :  { %v1781_v34 = vpop.xlane.xlu0 %1780  ;;  %v1817_v35 = vmul.f32 %v3675_v13, %v4584_v15 }
 0x70f   :  { %3680 = vrcp.f32 %v1781_v34 }
 0x710   :  { %3145 = vmatmul.mubr.f32.gmra.mrb[66].mxu0 %v1815_v28 }
 0x711   :  { %3147 = vmatprep.mubr.f32.mxu0 %v1816_v50  ;;  %v3677_v49 = vpop.eup %3676 }
 0x712   :  { %v1819_v16 = vmul.f32 %v3677_v49, %v4588_v55  ;;  %v1785_v6 = vpop.xlane.xlu0 %1784  ;;  %v4665_v49 = vld [vmem:[%s5068_s5] ss:$0 sm:$0xff] }
 0x713   :  { %3682 = vrcp.f32 %v1785_v6 }
 0x714   :  { %3148 = vmatmul.mubr.f32.gmra.mrb[68].mxu0 %v1817_v35 }
 0x715   :  { %v3679_v8 = vpop.eup %3678 }
 0x716   :  { %v1818_v40 = vmul.f32 %v3679_v8, %v4592_v32  ;;  %v1789_v15 = vpop.xlane.xlu0 %1788 }
 0x718   :  { %3150 = vmatprep.mubr.f32.mxu1 %v1818_v40 }
 0x719   :  { %v3681_v37 = vpop.eup %3680  ;;  %3151 = vmatmul.mubr.f32.vlgmr.msra.gmra.mrb[32].mxu1 %v1819_v16 }
 0x71a   :  { %v1820_v24 = vmul.f32 %v3681_v37, %v4596_v46  ;;  %3384 = vmatpush3.bf16.msra.mxu1 %v4377_v42  ;;  %v1793_v32 = vpop.xlane.xlu0 %1792 }
 0x71b   :  { %3386 = vmatprep.subr.bf16.mxu1 %v4388_v21 }
 0x71c   :  { %3153 = vmatprep.mubr.f32.mxu1 %v1820_v24 }
 0x71d   :  { %v3683_v46 = vpop.eup %3682 }
 0x71e   :  { %3388 = vmatpush3.bf16.msra.mxu1 %v4388_v21  ;;  %v1795_v39 = vpop.xlane.xlu0 %1794  ;;  %v1822_v21 = vmul.f32 %v3683_v46, %v4601_v43 }
 0x734   :  { %v1783_v61 = vpop.xlane.xlu1 %1782 }
 0x735   :  { %3684 = vrcp.f32 %v1783_v61 }
 0x736   :  { %3686 = vrcp.f32 %v1789_v15 }
 0x738   :  { %v1787_v55 = vpop.xlane.xlu1 %1786 }
 0x739   :  { %3688 = vrcp.f32 %v1787_v55 }
 0x73a   :  { %3690 = vrcp.f32 %v1793_v32 }
 0x73c   :  { %v1791_v62 = vpop.xlane.xlu1 %1790 }
 0x73d   :  { %3692 = vrcp.f32 %v1791_v62 }
 0x73e   :  { %3694 = vrcp.f32 %v1795_v39 }
 0x73f   :  { %v3685_v42 = vpop.eup %3684 }
 0x740   :  { %v1821_v17 = vmul.f32 %v3685_v42, %v4617_v36  ;;  %v3687_v9 = vpop.eup %3686 }
 0x741   :  { %v1824_v54 = vmul.f32 %v3687_v9, %v4604_v1  ;;  %v1017_v9 = vadd.f32 %v4505_v11, %v4665_v49 }
 0x742   :  { %3154 = vmatmul.mubr.f32.gmra.mrb[34].mxu1 %v1821_v17 }
 0x743   :  { %v3689_v57 = vpop.eup %3688  ;;  %3156 = vmatprep.mubr.f32.mxu1 %v1822_v21 }
 0x744   :  { %v1823_v27 = vmul.f32 %v3689_v57, %v4620_v10  ;;  %v3691_v47 = vpop.eup %3690  ;;  %v4686_v57 = vadd.f32 %v1017_v9, %v3789_v18 }
 0x745   :  { %v1826_v29 = vmul.f32 %v3691_v47, %v4607_v52 }
 0x746   :  { %3157 = vmatmul.mubr.f32.gmra.mrb[36].mxu1 %v1823_v27  ;;  %v1052_v27 = vadd.f32 %v4665_v49, %v4523_v4  ;;  %v1107_v47 = vmul.f32 %v4686_v57, %v4686_v57 }
 0x747   :  { %v3693_v56 = vpop.eup %3692  ;;  %3159 = vmatprep.mubr.f32.mxu1 %v1824_v54 }
 0x748   :  { %v1825_v60 = vmul.f32 %v3693_v56, %v4623_v22  ;;  %v3695_v30 = vpop.eup %3694  ;;  %v4691_v54 = vadd.f32 %v1052_v27, %v3852_v44  ;;  %v1125_v56 = vsel %vm98_vm0, %v1107_v47, 0.0  ;;  %v5107_v47 = vld [vmem:[#allocation5_spill] sm:$0xff] }
 0x749   :  { %v1827_v43 = vmul.f32 %v3695_v30, %v4610_v25 }
 0x74a   :  { %3160 = vmatmul.mubr.f32.gmra.mrb[38].mxu1 %v1825_v60  ;;  %v1114_v60 = vmul.f32 %v4691_v54, %v4691_v54 }
 0x74b   :  { %3162 = vmatprep.mubr.f32.mxu1 %v1826_v29 }
 0x74c   :  { %v1146_v11 = vsel %vm98_vm0, %v1114_v60, 0.0 }
 0x74e   :  { %3163 = vmatmul.mubr.f32.gmra.mrb[40].mxu1 %v1827_v43 }
 0x7df   :  { %v3143_v36 = vpop.f32.mrb[64].mxu0 }
 0x7e0   :  { %v1942_v45 = vpop.f32.mrb[65].mxu0 }
 0x7e1   :  { %3173 = vmatprep.mubr.msk.f32.mxu1 %vm98_vm0, %v1942_v45 }
 0x7e2   :  { %3174 = vmatmul.mubr.msk.f32.vlgmr.msra.gmra.mrb[42].mxu1 %vm98_vm0, %v3143_v36 }
 0x7e3   :  { %v3146_v1 = vpop.f32.mrb[66].mxu0 }
 0x7e4   :  { %v1952_v10 = vpop.f32.mrb[67].mxu0 }
 0x7e5   :  { %3176 = vmatprep.mubr.msk.f32.mxu1 %vm98_vm0, %v1952_v10 }
 0x7e6   :  { %3177 = vmatmul.mubr.msk.f32.gmra.mrb[44].mxu1 %vm98_vm0, %v3146_v1 }
 0x7e7   :  { %v3149_v22 = vpop.f32.mrb[68].mxu0 }
 0x7e8   :  { %v1962_v0 = vpop.f32.mrb[69].mxu0 }
 0x7e9   :  { %3179 = vmatprep.mubr.msk.f32.mxu1 %vm98_vm0, %v1962_v0 }
 0x7ea   :  { %3180 = vmatmul.mubr.msk.f32.gmra.mrb[46].mxu1 %vm98_vm0, %v3149_v22 }
 0x7ec   :  { %v3152_v52 = vpop.f32.mrb[32].mxu1 }
 0x7ed   :  { %v1972_v25 = vpop.f32.mrb[33].mxu1 }
 0x7ee   :  { %3182 = vmatprep.mubr.msk.f32.mxu1 %vm98_vm0, %v1972_v25 }
 0x7ef   :  { %3183 = vmatmul.mubr.msk.f32.gmra.mrb[48].mxu1 %vm98_vm0, %v3152_v52 }
 0x815   :  { %v3155_v59 = vpop.f32.mrb[34].mxu1 }
 0x816   :  { %v1982_v2 = vpop.f32.mrb[35].mxu1 }
 0x817   :  { %3185 = vmatprep.mubr.msk.f32.mxu1 %vm98_vm0, %v1982_v2 }
 0x818   :  { %3186 = vmatmul.mubr.msk.f32.gmra.mrb[50].mxu1 %vm98_vm0, %v3155_v59  ;;  %v1012_v59 = vadd.f32 %v4665_v49, %v4507_v14 }
 0x819   :  { %v3158_v19 = vpop.f32.mrb[36].mxu1 }
 0x81a   :  { %v1992_v34 = vpop.f32.mrb[37].mxu1 }
 0x81b   :  { %3188 = vmatprep.mubr.msk.f32.mxu1 %vm98_vm0, %v1992_v34 }
 0x81c   :  { %3189 = vmatmul.mubr.msk.f32.gmra.mrb[52].mxu1 %vm98_vm0, %v3158_v19  ;;  %v4711_v19 = vadd.f32 %v1012_v59, %v3772_v12  ;;  %v1027_v59 = vadd.f32 %v4509_v31, %v4665_v49 }
 0x81d   :  { %v3161_v28 = vpop.f32.mrb[38].mxu1 }
 0x81e   :  { %v2002_v13 = vpop.f32.mrb[39].mxu1 }
 0x81f   :  { %3191 = vmatprep.mubr.msk.f32.mxu1 %vm98_vm0, %v2002_v13 }
 0x820   :  { %3192 = vmatmul.mubr.msk.f32.gmra.mrb[54].mxu1 %vm98_vm0, %v3161_v28  ;;  %v1106_v28 = vmul.f32 %v4711_v19, %v4711_v19 }
 0x821   :  { %v3164_v50 = vpop.f32.mrb[40].mxu1 }
 0x822   :  { %v2012_v35 = vpop.f32.mrb[41].mxu1  ;;  %v1122_v14 = vsel %vm98_vm0, %v1106_v28, 0.0  ;;  %v4793_v28 = vadd.f32 %v1027_v59, %v3808_v26 }
 0x823   :  { %3194 = vmatprep.mubr.msk.f32.mxu1 %vm98_vm0, %v2012_v35 }
 0x824   :  { %3195 = vmatmul.mubr.msk.f32.gmra.mrb[56].mxu1 %vm98_vm0, %v3164_v50  ;;  %v1109_v31 = vmul.f32 %v4793_v28, %v4793_v28 }
 0x8b5   :  { %v3175_v8 = vpop.f32.mrb[42].mxu1 }
 0x8b6   :  { %v2141_v40 = vadd.f32 %v3175_v8, %v4665_v49  ;;  %v2135_v16 = vpop.f32.mrb[43].mxu1 }
 0x8b7   :  { %v2136_v24 = vadd.f32 %v4665_v49, %v2135_v16 }
 0x8b8   :  { %2232 = vrot.lane.b32.xlu0 %v2141_v40, %s3706_s28 }
 0x8b9   :  { %v3178_v37 = vpop.f32.mrb[44].mxu1 }
 0x8ba   :  { %v2145_v6 = vpop.f32.mrb[45].mxu1  ;;  %v2151_v61 = vadd.f32 %v3178_v37, %v4665_v49 }
 0x8bb   :  { %v2146_v39 = vadd.f32 %v4665_v49, %v2145_v6 }
 0x8bc   :  { %2230 = vrot.lane.b32.xlu0 %v2136_v24, %s3706_s28 }
 0x8bd   :  { %v3181_v15 = vpop.f32.mrb[46].mxu1 }
 0x8be   :  { %v2161_v32 = vadd.f32 %v3181_v15, %v4665_v49  ;;  %v2155_v55 = vpop.f32.mrb[47].mxu1 }
 0x8bf   :  { %v2156_v62 = vadd.f32 %v4665_v49, %v2155_v55 }
 0x8c0   :  { %2236 = vrot.lane.b32.xlu0 %v2151_v61, %s3706_s28  ;;  %2240 = vrot.lane.b32.xlu1 %v2161_v32, %s3706_s28 }
 0x8c2   :  { %v3184_v46 = vpop.f32.mrb[48].mxu1 }
 0x8c3   :  { %v2165_v42 = vpop.f32.mrb[49].mxu1  ;;  %v2171_v17 = vadd.f32 %v3184_v46, %v4665_v49 }
 0x8c4   :  { %2234 = vrot.lane.b32.xlu0 %v2146_v39, %s3706_s28  ;;  %2238 = vrot.lane.b32.xlu1 %v2156_v62, %s3706_s28  ;;  %v2166_v21 = vadd.f32 %v4665_v49, %v2165_v42  ;;  %v5105_v39 = vld [vmem:[#allocation3_spill] sm:$0xff] }
 0x8c8   :  { %2244 = vrot.lane.b32.xlu1 %v2171_v17, %s3706_s28 }
 0x8cc   :  { %2242 = vrot.lane.b32.xlu1 %v2166_v21, %s3706_s28  ;;  %v5106_v21 = vld [vmem:[#allocation2_spill] sm:$0xff] }
 0x8e3   :  { %1126 = vadd.xlane.f32.xlu0 %v1125_v56 }
 0x8e7   :  { %1147 = vadd.xlane.f32.xlu0 %v1146_v11 }
 0x8eb   :  { %v3187_v30 = vpop.f32.mrb[50].mxu1 }
 0x8ec   :  { %v2181_v29 = vadd.f32 %v3187_v30, %v4665_v49  ;;  %v2175_v43 = vpop.f32.mrb[51].mxu1  ;;  %v5108_v30 = vld [vmem:[#allocation4_spill] sm:$0xff] }
 0x8ed   :  { %v2176_v0 = vadd.f32 %v4665_v49, %v2175_v43 }
 0x8ee   :  { %2248 = vrot.lane.b32.xlu1 %v2181_v29, %s3706_s28 }
 0x8ef   :  { %v3190_v4 = vpop.f32.mrb[52].mxu1 }
 0x8f0   :  { %v2185_v36 = vpop.f32.mrb[53].mxu1  ;;  %v2191_v52 = vadd.f32 %v3190_v4, %v4665_v49 }
 0x8f1   :  { %v2186_v25 = vadd.f32 %v4665_v49, %v2185_v36  ;;  %v5109_v36 = vld [vmem:[#allocation6_spill] sm:$0xff] }
 0x8f3   :  { %v3193_v45 = vpop.f32.mrb[54].mxu1 }
 0x8f4   :  { %v2195_v1 = vpop.f32.mrb[55].mxu1  ;;  %v2201_v2 = vadd.f32 %v3193_v45, %v4665_v49 }
 0x8f5   :  { %v2196_v34 = vadd.f32 %v4665_v49, %v2195_v1 }
 0x8f7   :  { %v3196_v10 = vpop.f32.mrb[56].mxu1 }
 0x8f8   :  { %v2205_v22 = vpop.f32.mrb[57].mxu1  ;;  %v2211_v13 = vadd.f32 %v3196_v10, %v4665_v49 }
 0x8f9   :  { %v2206_v50 = vadd.f32 %v4665_v49, %v2205_v22 }
 0x8fd   :  { %2246 = vrot.lane.b32.xlu0 %v2176_v0, %s3706_s28  ;;  %v1022_v0 = vadd.f32 %v4665_v49, %v4511_v33  ;;  %v1032_v33 = vadd.f32 %v4665_v49, %v4515_v3 }
 0x901   :  { %2252 = vrot.lane.b32.xlu0 %v2191_v52, %s3706_s28 }
 0x905   :  { %2250 = vrot.lane.b32.xlu0 %v2186_v25, %s3706_s28 }
 0x909   :  { %2256 = vrot.lane.b32.xlu0 %v2201_v2, %s3706_s28  ;;  %v4787_v2 = vadd.f32 %v1022_v0, %v3792_v20  ;;  %v5113_v0 = vld [vmem:[#allocation10_spill] sm:$0xff] }
 0x90d   :  { %2254 = vrot.lane.b32.xlu0 %v2196_v34, %s3706_s28 }
 0x911   :  { %2260 = vrot.lane.b32.xlu0 %v2211_v13, %s3706_s28  ;;  %v4800_v13 = vadd.f32 %v1032_v33, %v5106_v21 }
 0x912   :  { %1123 = vadd.xlane.f32.xlu1 %v1122_v14  ;;  %v1131_v14 = vsel %vm98_vm0, %v1109_v31, 0.0 }
 0x915   :  { %2258 = vrot.lane.b32.xlu0 %v2206_v50, %s3706_s28 }
 0x92a   :  { %v2233_v35 = vpop.permute.xlu0 %2232 }
 0x92b   :  { %v4724_v8 = vadd.f32 %v2233_v35, %v3789_v18  ;;  %v1057_v35 = vadd.f32 %v4521_v63, %v4665_v49 }
 0x92d   :  { %v2295_v40 = vmul.f32 %v4724_v8, %v4724_v8 }
 0x92e   :  { %v2231_v16 = vpop.permute.xlu0 %2230 }
 0x92f   :  { %v4729_v37 = vadd.f32 %v2231_v16, %v3772_v12  ;;  %2328 = vrot.lane.b32.xlu0 %v2295_v40, %s3704_s0  ;;  %v4812_v16 = vadd.f32 %v1057_v35, %v5109_v36  ;;  %v5115_v35 = vld [vmem:[#allocation12_spill] sm:$0xff] }
 0x931   :  { %v2294_v24 = vmul.f32 %v4729_v37, %v4729_v37 }
 0x932   :  { %v2237_v6 = vpop.permute.xlu0 %2236  ;;  %v2241_v15 = vpop.permute.xlu1 %2240 }
 0x933   :  { %v4735_v61 = vadd.f32 %v2237_v6, %v3808_v26  ;;  %2326 = vrot.lane.b32.xlu1 %v2294_v24, %s3704_s0  ;;  %v4745_v62 = vadd.f32 %v2241_v15, %v5105_v39  ;;  %v1110_v26 = vmul.f32 %v4800_v13, %v4800_v13  ;;  %v1062_v24 = vadd.f32 %v4665_v49, %v4527_v51 }
 0x934   :  { %v1067_v6 = vadd.f32 %v4525_v38, %v4665_v49 }
 0x935   :  { %v2297_v18 = vmul.f32 %v4735_v61, %v4735_v61  ;;  %v2299_v17 = vmul.f32 %v4745_v62, %v4745_v62  ;;  %v1134_v3 = vsel %vm98_vm0, %v1110_v26, 0.0 }
 0x936   :  { %v2235_v32 = vpop.permute.xlu0 %2234  ;;  %v2239_v55 = vpop.permute.xlu1 %2238 }
 0x937   :  { %v4741_v12 = vadd.f32 %v2235_v32, %v3792_v20  ;;  %2332 = vrot.lane.b32.xlu1 %v2297_v18, %s3704_s0  ;;  %v4753_v9 = vadd.f32 %v2239_v55, %v5106_v21  ;;  %v1115_v18 = vmul.f32 %v4812_v16, %v4812_v16  ;;  %v5110_v32 = vld [vmem:[#allocation7_spill] sm:$0xff] }
 0x938   :  { %v4821_v55 = vadd.f32 %v1062_v24, %v5110_v32 }
 0x939   :  { %v2296_v46 = vmul.f32 %v4741_v12, %v4741_v12  ;;  %v2298_v27 = vmul.f32 %v4753_v9, %v4753_v9  ;;  %v1149_v21 = vsel %vm98_vm0, %v1115_v18, 0.0 }
 0x93a   :  { %v2245_v42 = vpop.permute.xlu1 %2244 }
 0x93b   :  { %2330 = vrot.lane.b32.xlu1 %v2296_v46, %s3704_s0  ;;  %v4759_v56 = vadd.f32 %v2245_v42, %v5107_v47  ;;  %v5111_v46 = vld [vmem:[#allocation8_spill] sm:$0xff] }
 0x93c   :  { %v4827_v63 = vadd.f32 %v1067_v6, %v5111_v46 }
 0x93d   :  { %v2301_v11 = vmul.f32 %v4759_v56, %v4759_v56 }
 0x93e   :  { %v2243_v60 = vpop.permute.xlu1 %2242 }
 0x93f   :  { %2336 = vrot.lane.b32.xlu1 %v2299_v17, %s3704_s0  ;;  %v4765_v29 = vadd.f32 %v2243_v60, %v5108_v30  ;;  %v1072_v17 = vadd.f32 %v4665_v49, %v4531_v23  ;;  %v1077_v23 = vadd.f32 %v4529_v53, %v4665_v49 }
 0x941   :  { %v2300_v43 = vmul.f32 %v4765_v29, %v4765_v29 }
 0x943   :  { %2334 = vrot.lane.b32.xlu1 %v2298_v27, %s3704_s0 }
 0x947   :  { %2340 = vrot.lane.b32.xlu1 %v2301_v11, %s3704_s0  ;;  %v1116_v11 = vmul.f32 %v4821_v55, %v4821_v55 }
 0x949   :  { %v1152_v59 = vsel %vm98_vm0, %v1116_v11, 0.0 }
 0x94b   :  { %2338 = vrot.lane.b32.xlu1 %v2300_v43, %s3704_s0 }
 0x960   :  { %v2249_v4 = vpop.permute.xlu1 %2248 }
 0x961   :  { %v4772_v45 = vadd.f32 %v2249_v4, %v5109_v36  ;;  %v1117_v4 = vmul.f32 %v4827_v63, %v4827_v63  ;;  %v5112_v36 = vld [vmem:[#allocation9_spill] sm:$0xff] }
 0x963   :  { %v2303_v1 = vmul.f32 %v4772_v45, %v4772_v45  ;;  %v1155_v33 = vsel %vm98_vm0, %v1117_v4, 0.0  ;;  %v1042_v4 = vadd.f32 %v4665_v49, %v4519_v7 }
 0x965   :  { %2344 = vrot.lane.b32.xlu0 %v2303_v1, %s3704_s0  ;;  %v4847_v1 = vadd.f32 %v1072_v17, %v5112_v36 }
 0x970   :  { %v1127_v10 = vpop.xlane.xlu0 %1126 }
 0x974   :  { %v4777_v22 = vpop.xlane.xlu0 %1147 }
 0x978   :  { %v2247_v52 = vpop.permute.xlu0 %2246 }
 0x979   :  { %v4782_v25 = vadd.f32 %v2247_v52, %v3852_v44  ;;  %v1108_v44 = vmul.f32 %v4787_v2, %v4787_v2 }
 0x97b   :  { %v2302_v34 = vmul.f32 %v4782_v25, %v4782_v25  ;;  %v1128_v20 = vsel %vm98_vm0, %v1108_v44, 0.0  ;;  %v1082_v44 = vadd.f32 %v4665_v49, %v4535_v58 }
 0x97c   :  { %v2253_v50 = vpop.permute.xlu0 %2252 }
 0x97d   :  { %2342 = vrot.lane.b32.xlu1 %v2302_v34, %s3704_s0  ;;  %v4824_v42 = vadd.f32 %v2253_v50, %v5111_v46  ;;  %v4857_v34 = vadd.f32 %v1077_v23, %v5113_v0 }
 0x97f   :  { %v2305_v38 = vmul.f32 %v4824_v42, %v4824_v42  ;;  %v1119_v26 = vmul.f32 %v4857_v34, %v4857_v34 }
 0x980   :  { %v2251_v40 = vpop.permute.xlu0 %2250 }
 0x981   :  { %v4835_v27 = vadd.f32 %v2251_v40, %v5110_v32  ;;  %v1161_v32 = vsel %vm98_vm0, %v1119_v26, 0.0 }
 0x984   :  { %1129 = vadd.xlane.f32.xlu0 %v1128_v20  ;;  %v2257_v15 = vpop.permute.xlu0 %2256 }
 0x985   :  { %v4852_v52 = vadd.f32 %v2257_v15, %v5113_v0  ;;  %v1087_v0 = vadd.f32 %v4533_v5, %v4665_v49 }
 0x987   :  { %v2307_v20 = vmul.f32 %v4852_v52, %v4852_v52 }
 0x988   :  { %1132 = vadd.xlane.f32.xlu0 %v1131_v14  ;;  %v2255_v43 = vpop.permute.xlu0 %2254  ;;  %v1118_v14 = vmul.f32 %v4847_v1, %v4847_v1 }
 0x989   :  { %v4865_v31 = vadd.f32 %v2255_v43, %v5112_v36  ;;  %v1037_v43 = vadd.f32 %v4513_v41, %v4665_v49 }
 0x98a   :  { %v1158_v24 = vsel %vm98_vm0, %v1118_v14, 0.0 }
 0x98b   :  { %v2306_v58 = vmul.f32 %v4865_v31, %v4865_v31  ;;  %v4899_v23 = vadd.f32 %v1037_v43, %v5105_v39 }
 0x98c   :  { %1135 = vadd.xlane.f32.xlu0 %v1134_v3  ;;  %v2261_v53 = vpop.permute.xlu0 %2260  ;;  %v5114_v3 = vld [vmem:[#allocation11_spill] sm:$0xff] }
 0x98d   :  { %v4873_v50 = vadd.f32 %v1082_v44, %v5114_v3  ;;  %v4878_v40 = vadd.f32 %v2261_v53, %v5115_v35 }
 0x98f   :  { %v2309_v15 = vmul.f32 %v4878_v40, %v4878_v40  ;;  %v1120_v46 = vmul.f32 %v4873_v50, %v4873_v50 }
 0x990   :  { %v2259_v6 = vpop.permute.xlu0 %2258 }
 0x991   :  { %v4885_v18 = vadd.f32 %v2259_v6, %v5114_v3 }
 0x993   :  { %v2308_v17 = vmul.f32 %v4885_v18, %v4885_v18 }
 0x99f   :  { %v1124_v51 = vpop.xlane.xlu1 %1123 }
 0x9a0   :  { %v4837_v60 = vadd.f32 %v1127_v10, %v1124_v51  ;;  %v2304_v10 = vmul.f32 %v4835_v27, %v4835_v27  ;;  %v1164_v51 = vsel %vm98_vm0, %v1120_v46, 0.0 }
 0x9a1   :  { %1150 = vadd.xlane.f32.xlu1 %v1149_v21  ;;  %v2329_v21 = vpop.permute.xlu0 %2328 }
 0x9a2   :  { %2348 = vrot.lane.b32.xlu0 %v2305_v38, %s3704_s0  ;;  %v2377_v38 = vsel %vm98_vm0, %v2329_v21, 0.0 }
 0x9a5   :  { %1153 = vadd.xlane.f32.xlu1 %v1152_v59  ;;  %v2327_v11 = vpop.permute.xlu1 %2326  ;;  %v1111_v59 = vmul.f32 %v4899_v23, %v4899_v23 }
 0x9a6   :  { %2346 = vrot.lane.b32.xlu0 %v2304_v10, %s3704_s0  ;;  %v4904_v10 = vadd.f32 %v1042_v4, %v5108_v30  ;;  %v2374_v14 = vsel %vm98_vm0, %v2327_v11, 0.0 }
 0x9a7   :  { %v1137_v41 = vsel %vm98_vm0, %v1111_v59, 0.0 }
 0x9a8   :  { %v1112_v39 = vmul.f32 %v4904_v10, %v4904_v10 }
 0x9a9   :  { %1156 = vadd.xlane.f32.xlu1 %v1155_v33  ;;  %v2333_v36 = vpop.permute.xlu1 %2332  ;;  %v4911_v33 = vadd.f32 %v1087_v0, %v5115_v35 }
 0x9aa   :  { %2352 = vrot.lane.b32.xlu0 %v2307_v20, %s3704_s0  ;;  %v1140_v44 = vsel %vm98_vm0, %v1112_v39, 0.0 }
 0x9ab   :  { %v1121_v5 = vmul.f32 %v4911_v33, %v4911_v33 }
 0x9ad   :  { %1159 = vadd.xlane.f32.xlu1 %v1158_v24  ;;  %v2331_v53 = vpop.permute.xlu1 %2330  ;;  %v1167_v26 = vsel %vm98_vm0, %v1121_v5, 0.0 }
 0x9ae   :  { %2350 = vrot.lane.b32.xlu0 %v2306_v58, %s3704_s0  ;;  %v2383_v58 = vsel %vm98_vm0, %v2333_v36, 0.0  ;;  %v2380_v35 = vsel %vm98_vm0, %v2331_v53, 0.0 }
 0x9b1   :  { %1162 = vadd.xlane.f32.xlu1 %v1161_v32  ;;  %v2337_v20 = vpop.permute.xlu1 %2336  ;;  %v1047_v32 = vadd.f32 %v4517_v48, %v4665_v49 }
 0x9b2   :  { %2356 = vrot.lane.b32.xlu0 %v2309_v15, %s3704_s0  ;;  %v2389_v6 = vsel %vm98_vm0, %v2337_v20, 0.0 }
 0x9b5   :  { %1165 = vadd.xlane.f32.xlu1 %v1164_v51  ;;  %v2335_v3 = vpop.permute.xlu1 %2334  ;;  %v4929_v51 = vadd.f32 %v1047_v32, %v5107_v47 }
 0x9b6   :  { %2354 = vrot.lane.b32.xlu0 %v2308_v17, %s3704_s0  ;;  %v2386_v46 = vsel %vm98_vm0, %v2335_v3, 0.0 }
 0x9b7   :  { %v1113_v11 = vmul.f32 %v4929_v51, %v4929_v51 }
 0x9b9   :  { %2378 = vadd.xlane.f32.xlu1 %v2377_v38  ;;  %v2341_v24 = vpop.permute.xlu1 %2340  ;;  %v1143_v43 = vsel %vm98_vm0, %v1113_v11, 0.0 }
 0x9ba   :  { %v2395_v48 = vsel %vm98_vm0, %v2341_v24, 0.0 }
 0x9bd   :  { %v2339_v15 = vpop.permute.xlu1 %2338 }
 0x9be   :  { %v2392_v38 = vsel %vm98_vm0, %v2339_v15, 0.0 }
 0x9d5   :  { %1138 = vadd.xlane.f32.xlu0 %v1137_v41 }
 0x9d7   :  { %v2345_v7 = vpop.permute.xlu0 %2344 }
 0x9d8   :  { %v2401_v30 = vsel %vm98_vm0, %v2345_v7, 0.0 }
 0x9d9   :  { %1141 = vadd.xlane.f32.xlu0 %v1140_v44  ;;  %2402 = vadd.xlane.f32.xlu1 %v2401_v30 }
 0x9dd   :  { %1168 = vadd.xlane.f32.xlu1 %v1167_v26  ;;  %2375 = vadd.xlane.f32.xlu0 %v2374_v14 }
 0x9e1   :  { %2384 = vadd.xlane.f32.xlu0 %v2383_v58 }
 0x9e5   :  { %2381 = vadd.xlane.f32.xlu0 %v2380_v35 }
 0x9e9   :  { %2390 = vadd.xlane.f32.xlu0 %v2389_v6 }
 0x9ed   :  { %2387 = vadd.xlane.f32.xlu0 %v2386_v46 }
 0x9ef   :  { %v2343_v17 = vpop.permute.xlu1 %2342 }
 0x9f0   :  { %v2398_v21 = vsel %vm98_vm0, %v2343_v17, 0.0 }
 0x9f1   :  { %2399 = vadd.xlane.f32.xlu0 %v2398_v21 }
 0x9f5   :  { %2393 = vadd.xlane.f32.xlu0 %v2392_v38 }
 0x9f9   :  { %1144 = vadd.xlane.f32.xlu0 %v1143_v43 }
 0x9fd   :  { %2396 = vadd.xlane.f32.xlu0 %v2395_v48 }
 0xa11   :  { %v1130_v49 = vpop.xlane.xlu0 %1129 }
 0xa12   :  { %v1171_v4 = vadd.f32 %v4837_v60, %v1130_v49 }
 0xa15   :  { %v1133_v47 = vpop.xlane.xlu0 %1132 }
 0xa16   :  { %v1172_v36 = vadd.f32 %v1171_v4, %v1133_v47 }
 0xa19   :  { %v1136_v0 = vpop.xlane.xlu0 %1135 }
 0xa1a   :  { %v1173_v59 = vadd.f32 %v1172_v36, %v1136_v0 }
 0xa1d   :  { %v2349_v53 = vpop.permute.xlu0 %2348 }
 0xa1e   :  { %v2407_v41 = vsel %vm98_vm0, %v2349_v53, 0.0 }
 0xa1f   :  { %2408 = vadd.xlane.f32.xlu1 %v2407_v41 }
 0xa21   :  { %v2347_v39 = vpop.permute.xlu0 %2346 }
 0xa22   :  { %v2404_v7 = vsel %vm98_vm0, %v2347_v39, 0.0 }
 0xa23   :  { %2405 = vadd.xlane.f32.xlu1 %v2404_v7 }
 0xa25   :  { %v2353_v30 = vpop.permute.xlu0 %2352 }
 0xa26   :  { %v2413_v44 = vsel %vm98_vm0, %v2353_v30, 0.0 }
 0xa27   :  { %2414 = vadd.xlane.f32.xlu1 %v2413_v44 }
 0xa29   :  { %v2351_v5 = vpop.permute.xlu0 %2350 }
 0xa2a   :  { %v2410_v20 = vsel %vm98_vm0, %v2351_v5, 0.0 }
 0xa2b   :  { %2411 = vadd.xlane.f32.xlu1 %v2410_v20 }
 0xa2d   :  { %v2357_v60 = vpop.permute.xlu0 %2356 }
 0xa2e   :  { %v1151_v14 = vpop.xlane.xlu1 %1150  ;;  %v2419_v6 = vsel %vm98_vm0, %v2357_v60, 0.0 }
 0xa2f   :  { %v1183_v26 = vadd.f32 %v1151_v14, %v4777_v22 }
 0xa31   :  { %v2355_v3 = vpop.permute.xlu0 %2354 }
 0xa32   :  { %v2416_v58 = vsel %vm98_vm0, %v2355_v3, 0.0  ;;  %v1154_v35 = vpop.xlane.xlu1 %1153 }
 0xa33   :  { %v1184_v24 = vadd.f32 %v1183_v26, %v1154_v35  ;;  %2417 = vadd.xlane.f32.xlu1 %v2416_v58 }
 0xa36   :  { %v1157_v15 = vpop.xlane.xlu1 %1156 }
 0xa37   :  { %v1185_v32 = vadd.f32 %v1184_v24, %v1157_v15  ;;  %2420 = vadd.xlane.f32.xlu1 %v2419_v6 }
 0xa3a   :  { %v1160_v46 = vpop.xlane.xlu1 %1159 }
 0xa3b   :  { %v1186_v17 = vadd.f32 %v1185_v32, %v1160_v46 }
 0xa3e   :  { %v1163_v21 = vpop.xlane.xlu1 %1162 }
 0xa3f   :  { %v1187_v38 = vadd.f32 %v1186_v17, %v1163_v21 }
 0xa42   :  { %v1166_v11 = vpop.xlane.xlu1 %1165 }
 0xa43   :  { %v4945_v43 = vadd.f32 %v1187_v38, %v1166_v11 }
 0xa46   :  { %v2379_v0 = vpop.xlane.xlu1 %2378 }
 0xa62   :  { %v1139_v48 = vpop.xlane.xlu0 %1138 }
 0xa63   :  { %v1174_v5 = vadd.f32 %v1173_v59, %v1139_v48 }
 0xa66   :  { %v1142_v22 = vpop.xlane.xlu0 %1141 }
 0xa67   :  { %v1175_v60 = vadd.f32 %v1174_v5, %v1142_v22 }
 0xa6a   :  { %v2376_v49 = vpop.xlane.xlu0 %2375 }
 0xa6b   :  { %v2422_v41 = vadd.f32 %v2379_v0, %v2376_v49  ;;  %v2403_v0 = vpop.xlane.xlu1 %2402 }
 0xa6e   :  { %v2385_v4 = vpop.xlane.xlu0 %2384 }
 0xa72   :  { %v2382_v47 = vpop.xlane.xlu0 %2381 }
 0xa73   :  { %v2423_v39 = vadd.f32 %v2422_v41, %v2382_v47 }
 0xa75   :  { %v2424_v30 = vadd.f32 %v2423_v39, %v2385_v4 }
 0xa76   :  { %v2391_v36 = vpop.xlane.xlu0 %2390 }
 0xa7a   :  { %v2388_v53 = vpop.xlane.xlu0 %2387 }
 0xa7b   :  { %v2425_v20 = vadd.f32 %v2424_v30, %v2388_v53 }
 0xa7d   :  { %v2426_v26 = vadd.f32 %v2425_v20, %v2391_v36 }
 0xa7e   :  { %v4947_v7 = vpop.xlane.xlu0 %2399 }
 0xa82   :  { %v2394_v44 = vpop.xlane.xlu0 %2393 }
 0xa83   :  { %v2427_v58 = vadd.f32 %v2426_v26, %v2394_v44 }
 0xa86   :  { %v1145_v14 = vpop.xlane.xlu0 %1144 }
 0xa87   :  { %v1176_v3 = vadd.f32 %v1175_v60, %v1145_v14  ;;  %v1169_v60 = vpop.xlane.xlu1 %1168 }
 0xa89   :  { %v1177_v35 = vrot.slane %v1176_v3, 4 }
 0xa8a   :  { %v2397_v24 = vpop.xlane.xlu0 %2396 }
 0xa8b   :  { %v2428_v6 = vadd.f32 %v2427_v58, %v2397_v24  ;;  %v1178_v15 = vadd.f32 %v1177_v35, %v1176_v3 }
 0xa8d   :  { %v2429_v32 = vrot.slane %v2428_v6, 4  ;;  %v1179_v46 = vrot.slane %v1178_v15, 2 }
 0xa8f   :  { %v2430_v17 = vadd.f32 %v2429_v32, %v2428_v6  ;;  %v1180_v21 = vadd.f32 %v1179_v46, %v1178_v15  ;;  %v2435_v46 = vadd.f32 %v2403_v0, %v4947_v7 }
 0xa91   :  { %v2431_v38 = vrot.slane %v2430_v17, 2  ;;  %v1181_v11 = vrot.slane %v1180_v21, 1 }
 0xa93   :  { %v2432_v49 = vadd.f32 %v2431_v38, %v2430_v17  ;;  %v1182_v4 = vadd.f32 %v1181_v11, %v1180_v21 }
 0xa95   :  { %v2433_v47 = vrot.slane %v2432_v49, 1  ;;  %v1196_v59 = vadd.f32 1e-05, %v1182_v4 }
 0xa97   :  { %v2434_v48 = vadd.f32 %v2433_v47, %v2432_v49  ;;  %3696 = vrsqrt.f32 %v1196_v59 }
 0xa99   :  { %v2448_v22 = vadd.f32 1e-05, %v2434_v48 }
 0xa9b   :  { %3698 = vrsqrt.f32 %v2448_v22 }
 0xaa1   :  { %v3697_v36 = vpop.eup %3696 }
 0xaa2   :  { %v1200_v53 = vmul.f32 2.0, %v3697_v36 }
 0xaa4   :  { %v1202_v39 = vmul.f32 %v1200_v53, %v4711_v19  ;;  %v1203_v30 = vmul.f32 %v1200_v53, %v4686_v57  ;;  %v1204_v44 = vmul.f32 %v1200_v53, %v4787_v2  ;;  %v1205_v5 = vmul.f32 %v1200_v53, %v4793_v28 }
 0xaa5   :  { %v3699_v41 = vpop.eup %3698  ;;  %v1206_v14 = vmul.f32 %v1200_v53, %v4800_v13  ;;  %v1207_v26 = vmul.f32 %v1200_v53, %v4899_v23  ;;  %v1208_v3 = vmul.f32 %v1200_v53, %v4904_v10  ;;  %v1209_v58 = vmul.f32 %v1200_v53, %v4929_v51 }
 0xaa6   :  { %v2452_v20 = vmul.f32 2.0, %v3699_v41 }
 0xaa8   :  { %v2454_v35 = vmul.f32 %v2452_v20, %v4729_v37  ;;  %v2455_v19 = vmul.f32 %v2452_v20, %v4724_v8  ;;  %v2456_v57 = vmul.f32 %v2452_v20, %v4741_v12  ;;  %v2457_v2 = vmul.f32 %v2452_v20, %v4735_v61 }
 0xaa9   :  { %v2458_v28 = vmul.f32 %v2452_v20, %v4753_v9  ;;  %v2459_v24 = vmul.f32 %v2452_v20, %v4745_v62  ;;  %v2460_v13 = vmul.f32 %v2452_v20, %v4765_v29  ;;  %v2461_v23 = vmul.f32 %v2452_v20, %v4759_v56 }
 0xaaa   :  { %v2470_v10 = vsel %vm98_vm0, %v1202_v39, %v2454_v35  ;;  %v2471_v51 = vsel %vm98_vm0, %v1203_v30, %v2455_v19  ;;  %v2472_v37 = vsel %vm98_vm0, %v1204_v44, %v2456_v57  ;;  %v2473_v8 = vsel %vm98_vm0, %v1205_v5, %v2457_v2 }
 0xaab   :  { %v2474_v12 = vsel %vm98_vm0, %v1206_v14, %v2458_v28  ;;  %v2475_v61 = vsel %vm98_vm0, %v1207_v26, %v2459_v24  ;;  %v2476_v9 = vsel %vm98_vm0, %v1208_v3, %v2460_v13  ;;  %v2477_v62 = vsel %vm98_vm0, %v1209_v58, %v2461_v23  ;;  %2487 = vst.msk [vmem:[%s5069_s6] sm:$0xff] %vm2486_vm2, %v2470_v10 }
 0xaac   :  { %2488 = vst.msk [vmem:[%s5069_s6 + $0x8] sm:$0xff] %vm2486_vm2, %v2471_v51  ;;  %2489 = vst.msk [vmem:[%s5069_s6 + $0x10] sm:$0xff] %vm2486_vm2, %v2472_v37  ;;  %v2409_v56 = vpop.xlane.xlu1 %2408  ;;  %v1189_v29 = vadd.f32 %v4945_v43, %v1169_v60 }
 0xaad   :  { %2490 = vst.msk [vmem:[%s5069_s6 + $0x18] sm:$0xff] %vm2486_vm2, %v2473_v8  ;;  %2491 = vst.msk [vmem:[%s5069_s6 + $0x20] sm:$0xff] %vm2486_vm2, %v2474_v12 }
 0xaae   :  { %2492 = vst.msk [vmem:[%s5069_s6 + $0x28] sm:$0xff] %vm2486_vm2, %v2475_v61  ;;  %2493 = vst.msk [vmem:[%s5069_s6 + $0x30] sm:$0xff] %vm2486_vm2, %v2476_v9  ;;  %v1190_v15 = vrot.slane %v1189_v29, 4 }
 0xaaf   :  { %2494 = vst.msk [vmem:[%s5069_s6 + $0x38] sm:$0xff] %vm2486_vm2, %v2477_v62 }
 0xab0   :  { %v2406_v6 = vpop.xlane.xlu1 %2405  ;;  %v1191_v17 = vadd.f32 %v1190_v15, %v1189_v29 }
 0xab1   :  { %v2436_v21 = vadd.f32 %v2435_v46, %v2406_v6 }
 0xab2   :  { %v1192_v38 = vrot.slane %v1191_v17, 2 }
 0xab3   :  { %v2437_v49 = vadd.f32 %v2436_v21, %v2409_v56 }
 0xab4   :  { %v2415_v32 = vpop.xlane.xlu1 %2414  ;;  %v1193_v47 = vadd.f32 %v1192_v38, %v1191_v17 }
 0xab6   :  { %v1194_v22 = vrot.slane %v1193_v47, 1 }
 0xab8   :  { %v2412_v11 = vpop.xlane.xlu1 %2411  ;;  %v1195_v39 = vadd.f32 %v1194_v22, %v1193_v47 }
 0xab9   :  { %v2438_v4 = vadd.f32 %v2437_v49, %v2412_v11 }
 0xaba   :  { %v1197_v44 = vadd.f32 1e-05, %v1195_v39 }
 0xabb   :  { %v2439_v48 = vadd.f32 %v2438_v4, %v2415_v32 }
 0xabc   :  { %3700 = vrsqrt.f32 %v1197_v44 }
 0xac0   :  { %v2418_v59 = vpop.xlane.xlu1 %2417 }
 0xac1   :  { %v2440_v36 = vadd.f32 %v2439_v48, %v2418_v59 }
 0xac4   :  { %v2421_v53 = vpop.xlane.xlu1 %2420 }
 0xac5   :  { %v2441_v41 = vadd.f32 %v2440_v36, %v2421_v53 }
 0xac6   :  { %v3701_v14 = vpop.eup %3700 }
 0xac7   :  { %v2442_v43 = vrot.slane %v2441_v41, 4  ;;  %v1201_v26 = vmul.f32 2.0, %v3701_v14 }
 0xac9   :  { %v2443_v30 = vadd.f32 %v2442_v43, %v2441_v41  ;;  %v1210_v58 = vmul.f32 %v1201_v26, %v4691_v54  ;;  %v1211_v35 = vmul.f32 %v1201_v26, %v4812_v16  ;;  %v1212_v19 = vmul.f32 %v1201_v26, %v4821_v55 }
 0xaca   :  { %v1213_v57 = vmul.f32 %v1201_v26, %v4827_v63  ;;  %v1214_v28 = vmul.f32 %v1201_v26, %v4847_v1  ;;  %v1215_v24 = vmul.f32 %v1201_v26, %v4857_v34  ;;  %v1216_v13 = vmul.f32 %v1201_v26, %v4873_v50 }
 0xacb   :  { %v2444_v5 = vrot.slane %v2443_v30, 2  ;;  %v1217_v23 = vmul.f32 %v1201_v26, %v4911_v33 }
 0xacd   :  { %v2445_v20 = vadd.f32 %v2444_v5, %v2443_v30 }
 0xacf   :  { %v2446_v7 = vrot.slane %v2445_v20, 1 }
 0xad1   :  { %v2447_v0 = vadd.f32 %v2446_v7, %v2445_v20 }
 0xad3   :  { %v2449_v60 = vadd.f32 1e-05, %v2447_v0 }
 0xad5   :  { %3702 = vrsqrt.f32 %v2449_v60 }
 0xadf   :  { %v3703_v3 = vpop.eup %3702 }
 0xae0   :  { %v2453_v2 = vmul.f32 2.0, %v3703_v3 }
 0xae2   :  { %v2462_v10 = vmul.f32 %v2453_v2, %v4782_v25  ;;  %v2463_v51 = vmul.f32 %v2453_v2, %v4772_v45  ;;  %v2464_v54 = vmul.f32 %v2453_v2, %v4835_v27  ;;  %v2465_v16 = vmul.f32 %v2453_v2, %v4824_v42 }
 0xae3   :  { %v2466_v55 = vmul.f32 %v2453_v2, %v4865_v31  ;;  %v2467_v63 = vmul.f32 %v2453_v2, %v4852_v52  ;;  %v2468_v1 = vmul.f32 %v2453_v2, %v4885_v18  ;;  %v2469_v34 = vmul.f32 %v2453_v2, %v4878_v40 }
 0xae4   :  { %v2478_v50 = vsel %vm98_vm0, %v1210_v58, %v2462_v10  ;;  %v2479_v33 = vsel %vm98_vm0, %v1211_v35, %v2463_v51  ;;  %v2480_v25 = vsel %vm98_vm0, %v1212_v19, %v2464_v54  ;;  %v2481_v45 = vsel %vm98_vm0, %v1213_v57, %v2465_v16 }
 0xae5   :  { %v2482_v27 = vsel %vm98_vm0, %v1214_v28, %v2466_v55  ;;  %v2483_v42 = vsel %vm98_vm0, %v1215_v24, %v2467_v63  ;;  %v2484_v31 = vsel %vm98_vm0, %v1216_v13, %v2468_v1  ;;  %v2485_v52 = vsel %vm98_vm0, %v1217_v23, %v2469_v34  ;;  %2495 = vst.msk [vmem:[%s5069_s6 + $0x40] sm:$0xff] %vm2486_vm2, %v2478_v50 }
 0xae6   :  { %2496 = vst.msk [vmem:[%s5069_s6 + $0x48] sm:$0xff] %vm2486_vm2, %v2479_v33  ;;  %2497 = vst.msk [vmem:[%s5069_s6 + $0x50] sm:$0xff] %vm2486_vm2, %v2480_v25 }
 0xae7   :  { %2498 = vst.msk [vmem:[%s5069_s6 + $0x58] sm:$0xff] %vm2486_vm2, %v2481_v45  ;;  %2499 = vst.msk [vmem:[%s5069_s6 + $0x60] sm:$0xff] %vm2486_vm2, %v2482_v27 }
 0xae8   :  { %2500 = vst.msk [vmem:[%s5069_s6 + $0x68] sm:$0xff] %vm2486_vm2, %v2483_v42  ;;  %2501 = vst.msk [vmem:[%s5069_s6 + $0x70] sm:$0xff] %vm2486_vm2, %v2484_v31 }
 0xae9   :  { %2502 = vst.msk [vmem:[%s5069_s6 + $0x78] sm:$0xff] %vm2486_vm2, %v2485_v52 }

</bundles_post_ra>
